<compile_context>
chip_gen: v6e
topology: v6e:2x2x1
jax: 0.10.0
libtpu: 0.0.40
codegen_flags: <defaults>
</compile_context>

<pallas_src>
import functools
import math

import jax
import jax.numpy as jnp
from jax.experimental import pallas as pl
from jax.experimental.pallas import tpu as pltpu


def _round_up(x, m):
    return ((x + m - 1) // m) * m


# ------------------------------ fused kernel --------------------------------

def _bottleneck_kernel(x_ref, w1_ref, b1_ref, w2_ref, b2_ref, w3_ref, b3_ref,
                       o_ref, pad_ref, *, H, W):
    """Fused conv1(1x1)+bn+relu -> conv2(3x3,pad1)+bn+relu -> conv3(1x1)+bn
    + identity residual + relu, for one batch element (whole image in VMEM).

    x_ref   : (H, W, Cp)      bf16   input / residual (channels lane-padded)
    w1_ref  : (Cp, Pp)        bf16   BN1 scale folded in
    w2_ref  : (3, 3, Pp, Pp)  bf16   BN2 scale folded in
    w3_ref  : (Pp, Cp)        bf16   BN3 scale folded in
    b*_ref  : (1, Pp/Cp)      f32    folded BN biases
    o_ref   : (H, W, Cp)      bf16
    pad_ref : (H+2, W+2, Pp)  bf16   VMEM scratch: zero-padded conv1 output
    """
    Cp = x_ref.shape[-1]
    Pp = w1_ref.shape[-1]

    x2d = x_ref[...].reshape(H * W, Cp)        # bf16; conv1 input + residual

    # ---- conv1 (1x1) + bn1 + relu -------------------------------------------
    t1 = jnp.dot(x2d, w1_ref[...], preferred_element_type=jnp.float32)
    t1 = jnp.maximum(t1 + b1_ref[...], 0.0).astype(jnp.bfloat16)

    # ---- build zero-padded conv1 output in VMEM (halo for the 3x3 conv) -----
    pad_ref[...] = jnp.zeros_like(pad_ref)
    zcol = jnp.zeros((H, 1, Pp), jnp.bfloat16)
    pad_ref[1:H + 1, :, :] = jnp.concatenate(
        [zcol, t1.reshape(H, W, Pp), zcol], axis=1)

    # ---- conv2 (3x3, pad=1, stride=1) + bn2 + relu: 9 unrolled taps ----------
    acc = jnp.zeros((H * W, Pp), jnp.float32)
    for kh in range(3):
        for kw in range(3):
            win = pad_ref[kh:kh + H, kw:kw + W, :].reshape(H * W, Pp)
            acc = acc + jnp.dot(win, w2_ref[kh, kw],
                                preferred_element_type=jnp.float32)
    t2 = jnp.maximum(acc + b2_ref[...], 0.0).astype(jnp.bfloat16)

    # ---- conv3 (1x1) + bn3 + identity residual + relu ------------------------
    acc3 = jnp.dot(t2, w3_ref[...], preferred_element_type=jnp.float32)
    acc3 = acc3 + b3_ref[...] + x2d.astype(jnp.float32)
    o_ref[...] = jnp.maximum(acc3, 0.0).reshape(H, W, Cp).astype(o_ref.dtype)


# ------------------------------- glue (JAX) ----------------------------------

def fold_bn(gamma, beta, running_mean, running_var, eps=1e-5):
    scale = gamma / jnp.sqrt(running_var + eps)
    bias = beta - running_mean * scale
    return scale.reshape(1, -1), bias.reshape(1, -1)


def bottleneck_forward(x_nchw, params, stride=1):
    """Pallas implementation of Bottleneck.forward (downsample=None)."""
    if stride != 1:
        # TODO(synk): stride != 1 needs the downsample branch; not implemented.
        raise NotImplementedError("identity residual requires stride == 1")

    w1, w2, w3 = params["w1"], params["w2"], params["w3"]
    planes = w1.shape[0]
    cout = w3.shape[0]

    x = jnp.transpose(x_nchw, (0, 2, 3, 1))            # NCHW -> NHWC
    N, H, W, Cin = x.shape
    assert Cin == cout, "identity residual requires inplanes == 4 * planes"

    Cp = _round_up(Cin, 128)      # lane-dense input / residual / output chans
    Pp = _round_up(planes, 128)   # lane-dense bottleneck channels
    assert Cp == _round_up(cout, 128)

    # Fold BN scales into the weights; BN biases stay as f32 row vectors.
    s1, b1 = fold_bn(*params["bn1"])
    s2, b2 = fold_bn(*params["bn2"])
    s3, b3 = fold_bn(*params["bn3"])

    w1m = jnp.transpose(w1[:, :, 0, 0], (1, 0)) * s1               # (Cin, planes)
    w2m = jnp.transpose(w2, (2, 3, 1, 0)) * s2.reshape(1, 1, 1, planes)
    w3m = jnp.transpose(w3[:, :, 0, 0], (1, 0)) * s3               # (planes, cout)

    w1m = jnp.pad(w1m, ((0, Cp - Cin), (0, Pp - planes))).astype(jnp.bfloat16)
    w2m = jnp.pad(w2m, ((0, 0), (0, 0), (0, Pp - planes),
                        (0, Pp - planes))).astype(jnp.bfloat16)
    w3m = jnp.pad(w3m, ((0, Pp - planes), (0, Cp - cout))).astype(jnp.bfloat16)
    b1p = jnp.pad(b1, ((0, 0), (0, Pp - planes)))
    b2p = jnp.pad(b2, ((0, 0), (0, Pp - planes)))
    b3p = jnp.pad(b3, ((0, 0), (0, Cp - cout)))

    xp = jnp.pad(x, ((0, 0), (0, 0), (0, 0),
                     (0, Cp - Cin))).astype(jnp.bfloat16)

    out = pl.pallas_call(
        functools.partial(_bottleneck_kernel, H=H, W=W),
        out_shape=jax.ShapeDtypeStruct((N, H, W, Cp), jnp.bfloat16),
        grid_spec=pltpu.PrefetchScalarGridSpec(
            num_scalar_prefetch=0,
            grid=(N,),                                  # parallel batch axis
            in_specs=[
                pl.BlockSpec((None, H, W, Cp), lambda n: (n, 0, 0, 0)),
                # constant index maps -> weights/biases DMA'd once, resident
                pl.BlockSpec((Cp, Pp), lambda n: (0, 0)),
                pl.BlockSpec((1, Pp), lambda n: (0, 0)),
                pl.BlockSpec((3, 3, Pp, Pp), lambda n: (0, 0, 0, 0)),
                pl.BlockSpec((1, Pp), lambda n: (0, 0)),
                pl.BlockSpec((Pp, Cp), lambda n: (0, 0)),
                pl.BlockSpec((1, Cp), lambda n: (0, 0)),
            ],
            out_specs=pl.BlockSpec((None, H, W, Cp), lambda n: (n, 0, 0, 0)),
            scratch_shapes=[pltpu.VMEM((H + 2, W + 2, Pp), jnp.bfloat16)],
        ),
        compiler_params=pltpu.CompilerParams(
            dimension_semantics=("parallel",)),
    )(xp, w1m, b1p, w2m, b2p, w3m, b3p)

    out = out[..., :cout].astype(jnp.float32)
    return jnp.transpose(out, (0, 3, 1, 2))             # NHWC -> NCHW


# ---------------------------- pure-JAX reference ------------------------------

def reference_forward(x_nchw, params, stride=1):
    def conv(x, w, stride):
        return jax.lax.conv_general_dilated(
            x, w, window_strides=(stride, stride),
            padding=[(w.shape[2] // 2, w.shape[2] // 2)] * 2,
            dimension_numbers=("NCHW", "OIHW", "NCHW"))

    def bn(x, p):
        g, b, m, v = p
        s = g / jnp.sqrt(v + 1e-5)
        return x * s[None, :, None, None] + (b - m * s)[None, :, None, None]

    out = jax.nn.relu(bn(conv(x_nchw, params["w1"], 1), params["bn1"]))
    out = jax.nn.relu(bn(conv(out, params["w2"], stride), params["bn2"]))
    out = bn(conv(out, params["w3"], 1), params["bn3"])
    out = out + x_nchw
    return jax.nn.relu(out)


# ----------------------------------- main -------------------------------------

def init_params(key, inplanes, planes):
    ks = jax.random.split(key, 10)

    def kaiming(k, shape):
        fan = shape[1] * shape[2] * shape[3]
        return jax.random.normal(k, shape, jnp.float32) * math.sqrt(2.0 / fan)

    def bn_params(k, c):
        k1, k2, k3 = jax.random.split(k, 3)
        gamma = 1.0 + 0.1 * jax.random.normal(k1, (c,), jnp.float32)
        beta = 0.1 * jax.random.normal(k2, (c,), jnp.float32)
        mean = 0.1 * jax.random.normal(k3, (c,), jnp.float32)
        var = jnp.ones((c,), jnp.float32)
        return (gamma, beta, mean, var)

    return {
        "w1": kaiming(ks[0], (planes, inplanes, 1, 1)),
        "bn1": bn_params(ks[1], planes),
        "w2": kaiming(ks[2], (planes, planes, 3, 3)),
        "bn2": bn_params(ks[3], planes),
        "w3": kaiming(ks[4], (planes * 4, planes, 1, 1)),
        "bn3": bn_params(ks[5], planes * 4),
    }


if __name__ == "__main__":
    key = jax.random.PRNGKey(0)
    kx, kp = jax.random.split(key)

    # inplanes must equal planes * expansion when downsample is None.
    inplanes, planes = 32, 8
    N, H, W = 2, 8, 8
    x = jax.random.normal(kx, (N, inplanes, H, W), jnp.float32)
    params = init_params(kp, inplanes, planes)

    out = bottleneck_forward(x, params, stride=1)
    out = jax.block_until_ready(out)

    ref = jax.block_until_ready(reference_forward(x, params, stride=1))
    assert out.shape == ref.shape == (N, planes * 4, H, W)
    if not jnp.allclose(out, ref, atol=5e-2, rtol=5e-2):
        raise AssertionError("Pallas Bottleneck output mismatch vs reference")

    print("KERNEL_OK")
</pallas_src>

<mosaic_0001>
module attributes {stable_mosaic.version = 11 : i64} {
  func.func @_bottleneck_kernel(%arg0: i32, %arg1: memref<1x8x8x128xbf16, #tpu.memory_space<vmem>>, %arg2: memref<128x128xbf16, #tpu.memory_space<vmem>>, %arg3: memref<1x128xf32, #tpu.memory_space<vmem>>, %arg4: memref<3x3x128x128xbf16, #tpu.memory_space<vmem>>, %arg5: memref<1x128xf32, #tpu.memory_space<vmem>>, %arg6: memref<128x128xbf16, #tpu.memory_space<vmem>>, %arg7: memref<1x128xf32, #tpu.memory_space<vmem>>, %arg8: memref<1x8x8x128xbf16, #tpu.memory_space<vmem>>, %arg9: memref<10x10x128xbf16, #tpu.memory_space<vmem>>) attributes {dimension_semantics = [#tpu.dimension_semantics<parallel>], iteration_bounds = array<i64: 2>, scalar_prefetch = 0 : i64, scratch_operands = 1 : i64, tpu.core_type = #tpu.core_type<tc>, window_params = [{transform_indices = @transform_0, window_bounds = array<i64: 1, 8, 8, 128>}, {pipeline_mode = #tpu.pipeline_mode<synchronous>, transform_indices = @transform_1, window_bounds = array<i64: 128, 128>}, {pipeline_mode = #tpu.pipeline_mode<synchronous>, transform_indices = @transform_2, window_bounds = array<i64: 1, 128>}, {pipeline_mode = #tpu.pipeline_mode<synchronous>, transform_indices = @transform_3, window_bounds = array<i64: 3, 3, 128, 128>}, {pipeline_mode = #tpu.pipeline_mode<synchronous>, transform_indices = @transform_4, window_bounds = array<i64: 1, 128>}, {pipeline_mode = #tpu.pipeline_mode<synchronous>, transform_indices = @transform_5, window_bounds = array<i64: 128, 128>}, {pipeline_mode = #tpu.pipeline_mode<synchronous>, transform_indices = @transform_6, window_bounds = array<i64: 1, 128>}, {transform_indices = @transform_7, window_bounds = array<i64: 1, 8, 8, 128>}]} {
    %c0 = arith.constant 0 : index
    %c0_0 = arith.constant 0 : index
    %c0_1 = arith.constant 0 : index
    %c0_2 = arith.constant 0 : index
    %0 = vector.load %arg1[%c0, %c0_0, %c0_1, %c0_2] : memref<1x8x8x128xbf16, #tpu.memory_space<vmem>>, vector<1x8x8x128xbf16>
    %1 = vector.shape_cast %0 : vector<1x8x8x128xbf16> to vector<8x8x128xbf16>
    %2 = vector.shape_cast %1 : vector<8x8x128xbf16> to vector<64x128xbf16>
    %c0_3 = arith.constant 0 : index
    %c0_4 = arith.constant 0 : index
    %3 = vector.load %arg2[%c0_3, %c0_4] : memref<128x128xbf16, #tpu.memory_space<vmem>>, vector<128x128xbf16>
    %cst = arith.constant dense<0.000000e+00> : vector<64x128xf32>
    %4 = tpu.matmul %2, %3, %cst {dimension_numbers = #tpu.dot_dimension_numbers<[1], [0], [0], [1], [0, 0, 1, 1], [], []>} : vector<64x128xbf16>, vector<128x128xbf16>, vector<64x128xf32> -> vector<64x128xf32>
    %c0_5 = arith.constant 0 : index
    %c0_6 = arith.constant 0 : index
    %5 = vector.load %arg3[%c0_5, %c0_6] : memref<1x128xf32, #tpu.memory_space<vmem>>, vector<1x128xf32>
    %6 = vector.broadcast %5 : vector<1x128xf32> to vector<64x128xf32>
    %7 = arith.addf %4, %6 : vector<64x128xf32>
    %cst_7 = arith.constant 0.000000e+00 : f32
    %8 = vector.broadcast %cst_7 : f32 to vector<64x128xf32>
    %9 = arith.maximumf %7, %8 : vector<64x128xf32>
    %10 = arith.truncf %9 : vector<64x128xf32> to vector<64x128xbf16>
    %cst_8 = arith.constant 0.000000e+00 : bf16
    %11 = vector.broadcast %cst_8 : bf16 to vector<10x10x128xbf16>
    %c0_9 = arith.constant 0 : index
    %c0_10 = arith.constant 0 : index
    %c0_11 = arith.constant 0 : index
    %12 = vector.load %arg9[%c0_9, %c0_10, %c0_11] : memref<10x10x128xbf16, #tpu.memory_space<vmem>>, vector<10x10x128xbf16>
    tpu.vector_store %arg9[%c0_9, %c0_10, %c0_11], %11 {strides = array<i32>} : memref<10x10x128xbf16, #tpu.memory_space<vmem>>, vector<10x10x128xbf16>,
    %cst_12 = arith.constant 0.000000e+00 : bf16
    %13 = vector.broadcast %cst_12 : bf16 to vector<8x1x128xbf16>
    %14 = vector.shape_cast %10 : vector<64x128xbf16> to vector<8x8x128xbf16>
    %15 = tpu.concatenate %13, %14, %13 in 1 : vector<8x1x128xbf16>, vector<8x8x128xbf16>, vector<8x1x128xbf16> -> vector<8x10x128xbf16>
    %c1 = arith.constant 1 : index
    %c0_13 = arith.constant 0 : index
    %c0_14 = arith.constant 0 : index
    %16 = vector.load %arg9[%c1, %c0_13, %c0_14] : memref<10x10x128xbf16, #tpu.memory_space<vmem>>, vector<8x10x128xbf16>
    tpu.vector_store %arg9[%c1, %c0_13, %c0_14], %15 {strides = array<i32>} : memref<10x10x128xbf16, #tpu.memory_space<vmem>>, vector<8x10x128xbf16>,
    %cst_15 = arith.constant 0.000000e+00 : f32
    %17 = vector.broadcast %cst_15 : f32 to vector<64x128xf32>
    %c0_16 = arith.constant 0 : index
    %c0_17 = arith.constant 0 : index
    %c0_18 = arith.constant 0 : index
    %18 = vector.load %arg9[%c0_16, %c0_17, %c0_18] : memref<10x10x128xbf16, #tpu.memory_space<vmem>>, vector<8x8x128xbf16>
    %19 = vector.shape_cast %18 : vector<8x8x128xbf16> to vector<64x128xbf16>
    %c0_19 = arith.constant 0 : index
    %c0_20 = arith.constant 0 : index
    %c0_21 = arith.constant 0 : index
    %c0_22 = arith.constant 0 : index
    %20 = vector.load %arg4[%c0_19, %c0_20, %c0_21, %c0_22] : memref<3x3x128x128xbf16, #tpu.memory_space<vmem>>, vector<1x1x128x128xbf16>
    %21 = vector.shape_cast %20 : vector<1x1x128x128xbf16> to vector<128x128xbf16>
    %cst_23 = arith.constant dense<0.000000e+00> : vector<64x128xf32>
    %22 = tpu.matmul %19, %21, %cst_23 {dimension_numbers = #tpu.dot_dimension_numbers<[1], [0], [0], [1], [0, 0, 1, 1], [], []>} : vector<64x128xbf16>, vector<128x128xbf16>, vector<64x128xf32> -> vector<64x128xf32>
    %23 = arith.addf %17, %22 : vector<64x128xf32>
    %c0_24 = arith.constant 0 : index
    %c1_25 = arith.constant 1 : index
    %c0_26 = arith.constant 0 : index
    %24 = vector.load %arg9[%c0_24, %c1_25, %c0_26] : memref<10x10x128xbf16, #tpu.memory_space<vmem>>, vector<8x8x128xbf16>
    %25 = vector.shape_cast %24 : vector<8x8x128xbf16> to vector<64x128xbf16>
    %c0_27 = arith.constant 0 : index
    %c1_28 = arith.constant 1 : index
    %c0_29 = arith.constant 0 : index
    %c0_30 = arith.constant 0 : index
    %26 = vector.load %arg4[%c0_27, %c1_28, %c0_29, %c0_30] : memref<3x3x128x128xbf16, #tpu.memory_space<vmem>>, vector<1x1x128x128xbf16>
    %27 = vector.shape_cast %26 : vector<1x1x128x128xbf16> to vector<128x128xbf16>
    %cst_31 = arith.constant dense<0.000000e+00> : vector<64x128xf32>
    %28 = tpu.matmul %25, %27, %cst_31 {dimension_numbers = #tpu.dot_dimension_numbers<[1], [0], [0], [1], [0, 0, 1, 1], [], []>} : vector<64x128xbf16>, vector<128x128xbf16>, vector<64x128xf32> -> vector<64x128xf32>
    %29 = arith.addf %23, %28 : vector<64x128xf32>
    %c0_32 = arith.constant 0 : index
    %c2 = arith.constant 2 : index
    %c0_33 = arith.constant 0 : index
    %30 = vector.load %arg9[%c0_32, %c2, %c0_33] : memref<10x10x128xbf16, #tpu.memory_space<vmem>>, vector<8x8x128xbf16>
    %31 = vector.shape_cast %30 : vector<8x8x128xbf16> to vector<64x128xbf16>
    %c0_34 = arith.constant 0 : index
    %c2_35 = arith.constant 2 : index
    %c0_36 = arith.constant 0 : index
    %c0_37 = arith.constant 0 : index
    %32 = vector.load %arg4[%c0_34, %c2_35, %c0_36, %c0_37] : memref<3x3x128x128xbf16, #tpu.memory_space<vmem>>, vector<1x1x128x128xbf16>
    %33 = vector.shape_cast %32 : vector<1x1x128x128xbf16> to vector<128x128xbf16>
    %cst_38 = arith.constant dense<0.000000e+00> : vector<64x128xf32>
    %34 = tpu.matmul %31, %33, %cst_38 {dimension_numbers = #tpu.dot_dimension_numbers<[1], [0], [0], [1], [0, 0, 1, 1], [], []>} : vector<64x128xbf16>, vector<128x128xbf16>, vector<64x128xf32> -> vector<64x128xf32>
    %35 = arith.addf %29, %34 : vector<64x128xf32>
    %c1_39 = arith.constant 1 : index
    %c0_40 = arith.constant 0 : index
    %c0_41 = arith.constant 0 : index
    %36 = vector.load %arg9[%c1_39, %c0_40, %c0_41] : memref<10x10x128xbf16, #tpu.memory_space<vmem>>, vector<8x8x128xbf16>
    %37 = vector.shape_cast %36 : vector<8x8x128xbf16> to vector<64x128xbf16>
    %c1_42 = arith.constant 1 : index
    %c0_43 = arith.constant 0 : index
    %c0_44 = arith.constant 0 : index
    %c0_45 = arith.constant 0 : index
    %38 = vector.load %arg4[%c1_42, %c0_43, %c0_44, %c0_45] : memref<3x3x128x128xbf16, #tpu.memory_space<vmem>>, vector<1x1x128x128xbf16>
    %39 = vector.shape_cast %38 : vector<1x1x128x128xbf16> to vector<128x128xbf16>
    %cst_46 = arith.constant dense<0.000000e+00> : vector<64x128xf32>
    %40 = tpu.matmul %37, %39, %cst_46 {dimension_numbers = #tpu.dot_dimension_numbers<[1], [0], [0], [1], [0, 0, 1, 1], [], []>} : vector<64x128xbf16>, vector<128x128xbf16>, vector<64x128xf32> -> vector<64x128xf32>
    %41 = arith.addf %35, %40 : vector<64x128xf32>
    %c1_47 = arith.constant 1 : index
    %c1_48 = arith.constant 1 : index
    %c0_49 = arith.constant 0 : index
    %42 = vector.load %arg9[%c1_47, %c1_48, %c0_49] : memref<10x10x128xbf16, #tpu.memory_space<vmem>>, vector<8x8x128xbf16>
    %43 = vector.shape_cast %42 : vector<8x8x128xbf16> to vector<64x128xbf16>
    %c1_50 = arith.constant 1 : index
    %c1_51 = arith.constant 1 : index
    %c0_52 = arith.constant 0 : index
    %c0_53 = arith.constant 0 : index
    %44 = vector.load %arg4[%c1_50, %c1_51, %c0_52, %c0_53] : memref<3x3x128x128xbf16, #tpu.memory_space<vmem>>, vector<1x1x128x128xbf16>
    %45 = vector.shape_cast %44 : vector<1x1x128x128xbf16> to vector<128x128xbf16>
    %cst_54 = arith.constant dense<0.000000e+00> : vector<64x128xf32>
    %46 = tpu.matmul %43, %45, %cst_54 {dimension_numbers = #tpu.dot_dimension_numbers<[1], [0], [0], [1], [0, 0, 1, 1], [], []>} : vector<64x128xbf16>, vector<128x128xbf16>, vector<64x128xf32> -> vector<64x128xf32>
    %47 = arith.addf %41, %46 : vector<64x128xf32>
    %c1_55 = arith.constant 1 : index
    %c2_56 = arith.constant 2 : index
    %c0_57 = arith.constant 0 : index
    %48 = vector.load %arg9[%c1_55, %c2_56, %c0_57] : memref<10x10x128xbf16, #tpu.memory_space<vmem>>, vector<8x8x128xbf16>
    %49 = vector.shape_cast %48 : vector<8x8x128xbf16> to vector<64x128xbf16>
    %c1_58 = arith.constant 1 : index
    %c2_59 = arith.constant 2 : index
    %c0_60 = arith.constant 0 : index
    %c0_61 = arith.constant 0 : index
    %50 = vector.load %arg4[%c1_58, %c2_59, %c0_60, %c0_61] : memref<3x3x128x128xbf16, #tpu.memory_space<vmem>>, vector<1x1x128x128xbf16>
    %51 = vector.shape_cast %50 : vector<1x1x128x128xbf16> to vector<128x128xbf16>
    %cst_62 = arith.constant dense<0.000000e+00> : vector<64x128xf32>
    %52 = tpu.matmul %49, %51, %cst_62 {dimension_numbers = #tpu.dot_dimension_numbers<[1], [0], [0], [1], [0, 0, 1, 1], [], []>} : vector<64x128xbf16>, vector<128x128xbf16>, vector<64x128xf32> -> vector<64x128xf32>
    %53 = arith.addf %47, %52 : vector<64x128xf32>
    %c2_63 = arith.constant 2 : index
    %c0_64 = arith.constant 0 : index
    %c0_65 = arith.constant 0 : index
    %54 = vector.load %arg9[%c2_63, %c0_64, %c0_65] : memref<10x10x128xbf16, #tpu.memory_space<vmem>>, vector<8x8x128xbf16>
    %55 = vector.shape_cast %54 : vector<8x8x128xbf16> to vector<64x128xbf16>
    %c2_66 = arith.constant 2 : index
    %c0_67 = arith.constant 0 : index
    %c0_68 = arith.constant 0 : index
    %c0_69 = arith.constant 0 : index
    %56 = vector.load %arg4[%c2_66, %c0_67, %c0_68, %c0_69] : memref<3x3x128x128xbf16, #tpu.memory_space<vmem>>, vector<1x1x128x128xbf16>
    %57 = vector.shape_cast %56 : vector<1x1x128x128xbf16> to vector<128x128xbf16>
    %cst_70 = arith.constant dense<0.000000e+00> : vector<64x128xf32>
    %58 = tpu.matmul %55, %57, %cst_70 {dimension_numbers = #tpu.dot_dimension_numbers<[1], [0], [0], [1], [0, 0, 1, 1], [], []>} : vector<64x128xbf16>, vector<128x128xbf16>, vector<64x128xf32> -> vector<64x128xf32>
    %59 = arith.addf %53, %58 : vector<64x128xf32>
    %c2_71 = arith.constant 2 : index
    %c1_72 = arith.constant 1 : index
    %c0_73 = arith.constant 0 : index
    %60 = vector.load %arg9[%c2_71, %c1_72, %c0_73] : memref<10x10x128xbf16, #tpu.memory_space<vmem>>, vector<8x8x128xbf16>
    %61 = vector.shape_cast %60 : vector<8x8x128xbf16> to vector<64x128xbf16>
    %c2_74 = arith.constant 2 : index
    %c1_75 = arith.constant 1 : index
    %c0_76 = arith.constant 0 : index
    %c0_77 = arith.constant 0 : index
    %62 = vector.load %arg4[%c2_74, %c1_75, %c0_76, %c0_77] : memref<3x3x128x128xbf16, #tpu.memory_space<vmem>>, vector<1x1x128x128xbf16>
    %63 = vector.shape_cast %62 : vector<1x1x128x128xbf16> to vector<128x128xbf16>
    %cst_78 = arith.constant dense<0.000000e+00> : vector<64x128xf32>
    %64 = tpu.matmul %61, %63, %cst_78 {dimension_numbers = #tpu.dot_dimension_numbers<[1], [0], [0], [1], [0, 0, 1, 1], [], []>} : vector<64x128xbf16>, vector<128x128xbf16>, vector<64x128xf32> -> vector<64x128xf32>
    %65 = arith.addf %59, %64 : vector<64x128xf32>
    %c2_79 = arith.constant 2 : index
    %c2_80 = arith.constant 2 : index
    %c0_81 = arith.constant 0 : index
    %66 = vector.load %arg9[%c2_79, %c2_80, %c0_81] : memref<10x10x128xbf16, #tpu.memory_space<vmem>>, vector<8x8x128xbf16>
    %67 = vector.shape_cast %66 : vector<8x8x128xbf16> to vector<64x128xbf16>
    %c2_82 = arith.constant 2 : index
    %c2_83 = arith.constant 2 : index
    %c0_84 = arith.constant 0 : index
    %c0_85 = arith.constant 0 : index
    %68 = vector.load %arg4[%c2_82, %c2_83, %c0_84, %c0_85] : memref<3x3x128x128xbf16, #tpu.memory_space<vmem>>, vector<1x1x128x128xbf16>
    %69 = vector.shape_cast %68 : vector<1x1x128x128xbf16> to vector<128x128xbf16>
    %cst_86 = arith.constant dense<0.000000e+00> : vector<64x128xf32>
    %70 = tpu.matmul %67, %69, %cst_86 {dimension_numbers = #tpu.dot_dimension_numbers<[1], [0], [0], [1], [0, 0, 1, 1], [], []>} : vector<64x128xbf16>, vector<128x128xbf16>, vector<64x128xf32> -> vector<64x128xf32>
    %71 = arith.addf %65, %70 : vector<64x128xf32>
    %c0_87 = arith.constant 0 : index
    %c0_88 = arith.constant 0 : index
    %72 = vector.load %arg5[%c0_87, %c0_88] : memref<1x128xf32, #tpu.memory_space<vmem>>, vector<1x128xf32>
    %73 = vector.broadcast %72 : vector<1x128xf32> to vector<64x128xf32>
    %74 = arith.addf %71, %73 : vector<64x128xf32>
    %cst_89 = arith.constant 0.000000e+00 : f32
    %75 = vector.broadcast %cst_89 : f32 to vector<64x128xf32>
    %76 = arith.maximumf %74, %75 : vector<64x128xf32>
    %77 = arith.truncf %76 : vector<64x128xf32> to vector<64x128xbf16>
    %c0_90 = arith.constant 0 : index
    %c0_91 = arith.constant 0 : index
    %78 = vector.load %arg6[%c0_90, %c0_91] : memref<128x128xbf16, #tpu.memory_space<vmem>>, vector<128x128xbf16>
    %cst_92 = arith.constant dense<0.000000e+00> : vector<64x128xf32>
    %79 = tpu.matmul %77, %78, %cst_92 {dimension_numbers = #tpu.dot_dimension_numbers<[1], [0], [0], [1], [0, 0, 1, 1], [], []>} : vector<64x128xbf16>, vector<128x128xbf16>, vector<64x128xf32> -> vector<64x128xf32>
    %c0_93 = arith.constant 0 : index
    %c0_94 = arith.constant 0 : index
    %80 = vector.load %arg7[%c0_93, %c0_94] : memref<1x128xf32, #tpu.memory_space<vmem>>, vector<1x128xf32>
    %81 = vector.broadcast %80 : vector<1x128xf32> to vector<64x128xf32>
    %82 = arith.addf %79, %81 : vector<64x128xf32>
    %83 = arith.extf %2 : vector<64x128xbf16> to vector<64x128xf32>
    %84 = arith.addf %82, %83 : vector<64x128xf32>
    %cst_95 = arith.constant 0.000000e+00 : f32
    %85 = vector.broadcast %cst_95 : f32 to vector<64x128xf32>
    %86 = arith.maximumf %84, %85 : vector<64x128xf32>
    %87 = vector.shape_cast %86 : vector<64x128xf32> to vector<8x8x128xf32>
    %88 = arith.truncf %87 : vector<8x8x128xf32> to vector<8x8x128xbf16>
    %c0_96 = arith.constant 0 : index
    %c0_97 = arith.constant 0 : index
    %c0_98 = arith.constant 0 : index
    %c0_99 = arith.constant 0 : index
    %89 = vector.load %arg8[%c0_96, %c0_97, %c0_98, %c0_99] : memref<1x8x8x128xbf16, #tpu.memory_space<vmem>>, vector<1x8x8x128xbf16>
    %90 = vector.shape_cast %89 : vector<1x8x8x128xbf16> to vector<8x8x128xbf16>
    %91 = vector.shape_cast %88 : vector<8x8x128xbf16> to vector<1x8x8x128xbf16>
    tpu.vector_store %arg8[%c0_96, %c0_97, %c0_98, %c0_99], %91 {strides = array<i32>} : memref<1x8x8x128xbf16, #tpu.memory_space<vmem>>, vector<1x8x8x128xbf16>,
    return
  }
  func.func @transform_0(%arg0: i32) -> (i32, i32, i32, i32) {
    %c0_i32 = arith.constant 0 : i32
    %c0_i32_0 = arith.constant 0 : i32
    %c0_i32_1 = arith.constant 0 : i32
    %c0_i32_2 = arith.constant 0 : i32
    return %arg0, %c0_i32, %c0_i32_0, %c0_i32_1 : i32, i32, i32, i32
  }
  func.func @transform_1(%arg0: i32) -> (i32, i32) {
    %c0_i32 = arith.constant 0 : i32
    %c0_i32_0 = arith.constant 0 : i32
    %c0_i32_1 = arith.constant 0 : i32
    return %c0_i32, %c0_i32_0 : i32, i32
  }
  func.func @transform_2(%arg0: i32) -> (i32, i32) {
    %c0_i32 = arith.constant 0 : i32
    %c0_i32_0 = arith.constant 0 : i32
    %c0_i32_1 = arith.constant 0 : i32
    return %c0_i32, %c0_i32_0 : i32, i32
  }
  func.func @transform_3(%arg0: i32) -> (i32, i32, i32, i32) {
    %c0_i32 = arith.constant 0 : i32
    %c0_i32_0 = arith.constant 0 : i32
    %c0_i32_1 = arith.constant 0 : i32
    %c0_i32_2 = arith.constant 0 : i32
    %c0_i32_3 = arith.constant 0 : i32
    return %c0_i32, %c0_i32_0, %c0_i32_1, %c0_i32_2 : i32, i32, i32, i32
  }
  func.func @transform_4(%arg0: i32) -> (i32, i32) {
    %c0_i32 = arith.constant 0 : i32
    %c0_i32_0 = arith.constant 0 : i32
    %c0_i32_1 = arith.constant 0 : i32
    return %c0_i32, %c0_i32_0 : i32, i32
  }
  func.func @transform_5(%arg0: i32) -> (i32, i32) {
    %c0_i32 = arith.constant 0 : i32
    %c0_i32_0 = arith.constant 0 : i32
    %c0_i32_1 = arith.constant 0 : i32
    return %c0_i32, %c0_i32_0 : i32, i32
  }
  func.func @transform_6(%arg0: i32) -> (i32, i32) {
    %c0_i32 = arith.constant 0 : i32
    %c0_i32_0 = arith.constant 0 : i32
    %c0_i32_1 = arith.constant 0 : i32
    return %c0_i32, %c0_i32_0 : i32, i32
  }
  func.func @transform_7(%arg0: i32) -> (i32, i32, i32, i32) {
    %c0_i32 = arith.constant 0 : i32
    %c0_i32_0 = arith.constant 0 : i32
    %c0_i32_1 = arith.constant 0 : i32
    %c0_i32_2 = arith.constant 0 : i32
    return %arg0, %c0_i32, %c0_i32_0, %c0_i32_1 : i32, i32, i32, i32
  }
}

</mosaic_0001>

<bundles_post_ra>
// kernel: tpu_custom_call.1
= control target key start
LH: loop header
LB: loop body
LE: loop exit
PB: predicated region body
PF: predicated region fallthrough
CT: control target
= control target key end

     0   :  { %s4650_s0 = inlined_call_operand.hbm [shape: bf16[2,8,8,128], index: 0, kind: input, shape index: {}]   ;;  %s4651_s1 = inlined_call_operand.hbm [shape: bf16[128,128], index: 1, kind: input, shape index: {}]   ;;  %s4652_s2 = inlined_call_operand.vmem [shape: f32[1,128], index: 2, kind: input, shape index: {}]   ;;  %s4653_s3 = inlined_call_operand.hbm [shape: bf16[3,3,128,128], index: 3, kind: input, shape index: {}]   ;;  %s4654_s4 = inlined_call_operand.vmem [shape: f32[1,128], index: 4, kind: input, shape index: {}]   ;;  %s4655_s5 = inlined_call_operand.hbm [shape: bf16[128,128], index: 5, kind: input, shape index: {}]   ;;  %s4656_s6 = inlined_call_operand.vmem [shape: f32[1,128], index: 6, kind: input, shape index: {}]   ;;  %s4657_s7 = inlined_call_operand.hbm [shape: bf16[2,8,8,128], index: 7, kind: output, shape index: {}]  }
   0x1   :  { %4664 = sst [smem:[#allocation21_spill]] %s4651_s1 }
   0x2   :  { %12 = vsyncpa [#allocation4], 0 }
   0x3   :  { %14 = vsyncpa [#allocation4 + $0x1], 0 }
   0x4   :  { %15 = vsyncpa [#allocation7], 0 }
   0x5   :  { %16 = vsyncpa [#allocation10], 0 }
   0x6   :  { %17 = vsyncpa [#allocation5], 0 }
   0x7   :  { %19 = vsyncpa [#allocation5 + $0x1], 0  ;;  %s4076_s24 = smov 0   ;;  %s4078_s25 = smov 0  }
   0x8   :  { %s4080_s26 = smov 0   ;;  %s4082_s27 = smov 0  }
   0x9 LB: > { %s4097_s28 = sadd.s32 4294967295, %s4024_s27   ;;  %s3008_s29 = sadd.s32 4294967294, %s4024_s27   ;;  %s4024_s27 = sphi %s4082_s27, %s4704_s27   ;;  %s4020_s26 = sphi %s4080_s26, %s4703_s26   ;;  %s4016_s25 = sphi %s4078_s25, %s4702_s25   ;;  %s4012_s24 = sphi %s4076_s24, %s4701_s24  }
   0xa   : > { %p45_p0 = scmp.ne.s32.totalorder %s4016_s25, %s4012_s24  ;;  %p4658_p1 = scmp.eq.s32.totalorder %s4097_s28, 0 }
   0xb   : > { %p195_p2 = scmp.eq.s32.totalorder %s4097_s28, 1  ;;  %p201_p3 = scmp.eq.s32.totalorder %s3008_s29, 1 }
   0xc   : > { %p4106_p4 = por %p4658_p1, %p45_p0  ;;  %p3009_p5 = scmp.ge.s32.totalorder %s4024_s27, 1 }
   0xd   : > { %p4111_p6 = por %p201_p3, %p45_p0  ;;  %p208_p7 = scmp.lt.s32.totalorder %s4024_s27, 3 }
   0xe   : > { %s4665_s30 = scalar_select %p4106_p4, 1, 0 }
   0xf   : > { %s4666_s8 = scalar_select %p4111_p6, 1, 0 }
  0x10   : > { %p4116_p8 = pnand %p3009_p5, %p208_p7  ;;  %s4026_s10 = smov [#allocation6]  }
  0x11   : > { %s220_s11 = sshll.u32 %s4026_s10, 4  ;;  %s4027_s13 = smov [#allocation8]   ;;  %s221_s11 = int_to_ptr.vmem [resolvable:$true] %s220_s11 }
  0x12   : > { %s4667_s9 = scalar_select %p4116_p8, 1, 0 }
  0x13   : > { %p3668_p9 = pneg %p4116_p8  ;;  %s236_s14 = sshll.u32 %s4027_s13, 4  ;;  %s237_s14 = int_to_ptr.vmem [resolvable:$true] %s236_s14 }
  0x14   : > { %s4028_s15 = smov [#allocation9]   ;;  %s3857_s17 = scalar_lea.vmem %s221_s11, 1024 }
  0x15   : > { %p4125_p11 = pnand %p3668_p9, %p4658_p1  ;;  %s252_s16 = sshll.u32 %s4028_s15, 4  ;;  %s253_s16 = int_to_ptr.vmem [resolvable:$true] %s252_s16 }
  0x16   : > { %p3858_p13 = scmp.ne.s32.totalorder %s221_s11, %s3857_s17  ;;  %p3865_p5 = scmp.lt.s32.totalorder %s221_s11, %s221_s11 }
  0x17   : > { %p3848_p12 = pneg %p4125_p11  ;;  %p3866_p7 = scmp.lt.s32.totalorder %s3857_s17, %s3857_s17 }
  0x19   : > { %p3860_p0 = pnand %p3858_p13, %p3848_p12  ;;  %p3867_p9 = por %p3866_p7, %p3865_p5 }
  0x1b   : > { %p3861_p3 = pneg %p3860_p0 }
  0x1d   : > { %p3868_p10 = pnand %p3867_p9, %p3861_p3 }
  0x1f   : > { %3871 = shalt.err (!%p3868_p10)
}
  0x20   : > { %s4659_s18 = smov 64   ;;  %s4660_s19 = smov 4  }
  0x21   : > { %s4669_s1 = sld [smem:[#allocation21_spill]]  ;;  %s3883_s22 = scalar_lea.vmem %s237_s14, 9216 }
  0x22   : > { %p3884_p13 = scmp.ne.s32.totalorder %s237_s14, %s3883_s22  ;;  %p3891_p3 = scmp.lt.s32.totalorder %s237_s14, %s237_s14 }
  0x23   : > { %p3892_p10 = scmp.lt.s32.totalorder %s3883_s22, %s3883_s22 }
  0x24   : > { %p3886_p0 = pnand %p3884_p13, %p3848_p12 }
  0x25   : > { %p3893_p7 = por %p3892_p10, %p3891_p3 }
  0x26   : > { %p3887_p5 = pneg %p3886_p0 }
  0x27   : > { %3671 = dma.hbm_to_vmem [thread:$0]  (!%p4125_p11), %s4669_s1, 1024, %s221_s11, [#allocation7], %s4659_s18, %s4659_s18, %s4660_s19  }
  0x28   : > { %p3894_p9 = pnand %p3893_p7, %p3887_p5 }
  0x2a   : > { %3897 = shalt.err (!%p3894_p9)
}
  0x2b   : > { %3674 = dma.hbm_to_vmem [thread:$0]  (!%p4125_p11), %s4653_s3, 9216, %s237_s14, [#allocation7], %s4659_s18, %s4659_s18, %s4660_s19  }
  0x2c   : > { %s3909_s10 = scalar_lea.vmem %s253_s16, 1024  ;;  %p3917_p3 = scmp.lt.s32.totalorder %s253_s16, %s253_s16 }
  0x2d   : > { %p3910_p1 = scmp.ne.s32.totalorder %s253_s16, %s3909_s10  ;;  %p3918_p5 = scmp.lt.s32.totalorder %s3909_s10, %s3909_s10 }
  0x2f   : > { %p3912_p13 = pnand %p3910_p1, %p3848_p12  ;;  %p3919_p10 = por %p3918_p5, %p3917_p3 }
  0x31   : > { %p3913_p0 = pneg %p3912_p13 }
  0x33   : > { %p3920_p7 = pnand %p3919_p10, %p3913_p0 }
  0x35   : > { %3923 = shalt.err (!%p3920_p7)
}
  0x36   : > { %3677 = dma.hbm_to_vmem [thread:$0]  (!%p4125_p11), %s4655_s5, 1024, %s253_s16, [#allocation10], %s4659_s18, %s4659_s18, %s4660_s19  }
  0x37   : > { %s4165_s14 = sadd.s32 1, %s4024_s27   ;;  %s32_s15 = sadd.s32 1, %s4020_s26 }
  0x38   : > { %s29_s12 = ssub.s32 %s4024_s27, %s4165_s14  ;;  %p39_p12 = scmp.ne.s32.totalorder %s4020_s26, %s4016_s25 }
  0x39   : > { %p30_p1 = scmp.eq.s32.totalorder %s29_s12, 0  ;;  %p40_p9 = scmp.eq.s32.totalorder %s4024_s27, 0 }
  0x3a   : > { %p3689_p13 = scmp.lt.s32.totalorder %s4024_s27, 2  ;;  %p4179_p3 = por %p195_p2, %p39_p12 }
  0x3b   : > { %s4175_s17 = scalar_select %p30_p1, %s4020_s26, %s32_s15  }
  0x3c   : > { %p41_p0 = por %p40_p9, %p39_p12  ;;  %s269_s21 = sand.u32 1, %s4020_s26  }
  0x3d   : > { %s4670_s20 = scalar_select %p4179_p3, 1, 0 }
  0x3e   : > { %s3207_s22 = sshll.u32 %s4024_s27, 9  ;;  %s3014_s16 = sshll.u32 %s269_s21, 5 }
  0x3f   : > { %s4188_s10 = scalar_lea.hbm %s4650_s0, %s3207_s22  ;;  %s273_s11 = scalar_lea.vmem [#allocation3], %s3014_s16 }
  0x40   : > { %s280_s13 = sshll.u32 %s273_s11, 4  ;;  %p4190_p11 = pnand %p3689_p13, %p41_p0  ;;  %s4194_s13 = int_to_ptr.vmem [resolvable:$true] %s280_s13 }
  0x41   : > { %s4196_s15 = scalar_lea.sflag [#allocation4], %s269_s21  ;;  %s3924_s18 = scalar_lea.hbm %s4188_s10, 512 }
  0x42   : > { %p3925_p2 = scmp.ne.s32.totalorder %s4188_s10, %s3924_s18  ;;  %p3926_p5 = pneg %p4190_p11 }
  0x43   : > { %s3929_s16 = scalar_lea.hbm %s4650_s0, 1024  ;;  %p3930_p1 = scmp.lt.s32.totalorder %s4188_s10, %s4650_s0 }
  0x44   : > { %p3927_p10 = pnand %p3926_p5, %p3925_p2  ;;  %p3931_p12 = scmp.lt.s32.totalorder %s3929_s16, %s3924_s18 }
  0x46   : > { %p3928_p7 = pneg %p3927_p10  ;;  %p3932_p9 = por %p3931_p12, %p3930_p1 }
  0x48   : > { %p3933_p13 = pnand %p3932_p9, %p3928_p7 }
  0x4a   : > { %3936 = shalt.err (!%p3933_p13)
}
  0x4b   : > { %s3937_s21 = scalar_lea.vmem %s4194_s13, 512  ;;  %s4031_s19 = smov [#allocation3]  }
  0x4c   : > { %p3938_p0 = scmp.ne.s32.totalorder %s4194_s13, %s3937_s21  ;;  %s3942_s1 = sshll.u32 %s4031_s19, 4  ;;  %s3943_s1 = int_to_ptr.vmem [resolvable:$false] %s3942_s1 }
  0x4d   : > { %s3944_s22 = scalar_lea.vmem %s3943_s1, 1024  ;;  %p3945_p10 = scmp.lt.s32.totalorder %s4194_s13, %s3943_s1 }
  0x4e   : > { %p3940_p6 = pnand %p3938_p0, %p3926_p5  ;;  %p3946_p3 = scmp.lt.s32.totalorder %s3944_s22, %s3937_s21 }
  0x50   : > { %p3941_p2 = pneg %p3940_p6  ;;  %p3947_p4 = por %p3946_p3, %p3945_p10 }
  0x52   : > { %p3948_p8 = pnand %p3947_p4, %p3941_p2 }
  0x54   : > { %3951 = shalt.err (!%p3948_p8)
}
  0x55   : > { %s4672_s18 = smov 4   ;;  %s4673_s23 = smov 64  }
  0x56   : > { %3681 = dma.hbm_to_vmem [thread:$0]  (!%p4190_p11), %s4188_s10, 512, %s4194_s13, %s4196_s15, %s4673_s23, %s4673_s23, %s4672_s18  }
  0x57   : > { %p4674_p6 = scmp.ne.s32.totalorder %s4667_s9, 0 }
  0x59   : > { %292 = sbr.rel (%p4674_p6) target bundleno = 942 (0x3ae), region = 48 }
  0x5e   : > { %s4223_s19 = sand.u32 1, %s4016_s25   ;;  %p4675_p4 = scmp.ne.s32.totalorder %s4665_s30, 0 }
  0x5f   : > { %s3018_s1 = sshll.u32 %s4223_s19, 5  ;;  %s295_s16 = scalar_lea.sflag [#allocation4], %s4223_s19 }
  0x60   : > { %s4229_s12 = scalar_lea.vmem [#allocation3], %s3018_s1 }
  0x61   : > { %3995 = dma.done.wait (%p4675_p4), %s295_s16, 512  }
  0x62   : > { %3997 = vsyncadd (%p4675_p4), %s295_s16, 4294966784  ;;  %p4676_p8 = scmp.eq.s32.totalorder %s4097_s28, 0 }
  0x64   : > { %3999 = dma.done.wait (%p4676_p8), [#allocation7], 10240   ;;  %p4677_p3 = pmov %p4676_p8 }
  0x66   : > { %4001 = vsyncadd (%p4677_p3), [#allocation7], 4294957056  ;;  %p4678_p11 = pmov %p4677_p3 }
  0x67   : > { %p4679_p5 = pmov %p4677_p3 }
  0x68   : > { %4003 = dma.done.wait (%p4678_p11), [#allocation10], 1024  }
  0x69   : > { %4005 = vsyncadd (%p4679_p5), [#allocation10], 4294966272  ;;  %v3734_v0 = vld [vmem:[#allocation6 + $0x38] sm:$0xff]   ;;  %v3735_v1 = vld [vmem:[#allocation6 + $0x30] sm:$0xff]   ;;  %v4032_v14 = vmov 0   ;;  %vm626_vm0 = vcmask 1040384  }
  0x6a   : > { %3372 = vmatprep.subr.bf16.mxu0 %v3734_v0  ;;  %v3736_v2 = vld [vmem:[#allocation6 + $0x28] sm:$0xff]   ;;  %v3737_v3 = vld [vmem:[#allocation6 + $0x20] sm:$0xff]   ;;  %v3738_v5 = vld [vmem:[#allocation6 + $0x18] sm:$0xff]   ;;  %528 = vst [vmem:[#allocation2 + $0x18] sm:$0xf] %v4032_v14  ;;  %vm637_vm2 = vcmask 1044480  }
  0x6b   : > { %3373 = vmatpush3.bf16.msra.mxu0 %v3734_v0  ;;  %v342_v4 = vld [vmem:[%s4229_s12] sm:$0xff]   ;;  %v3739_v6 = vld [vmem:[#allocation6 + $0x10] sm:$0xff]   ;;  %v3740_v7 = vld [vmem:[#allocation6 + $0x8] sm:$0xff]   ;;  %529 = vst [vmem:[#allocation2 + $0x1c] sm:$0x1] %v4032_v14  ;;  %vm1175_vm9 = vcmask 1042432  }
  0x6c   : > { %3374 = vmatprep.subr.bf16.mxu0 %v3735_v1  ;;  %3388 = vmatprep.mubr.bf16.mxu0 %v342_v4  ;;  %v3741_v8 = vld [vmem:[#allocation6] sm:$0xff]   ;;  %v344_v9 = vld [vmem:[%s4229_s12 + $0x8] sm:$0xff]   ;;  %v346_v10 = vld [vmem:[%s4229_s12 + $0x10] sm:$0xff]   ;;  %522 = vst [vmem:[#allocation2] sm:$0xf] %v4032_v14  ;;  %vm1176_vm10 = vcmask 1046532  }
  0x6d   : > { %v348_v11 = vld [vmem:[%s4229_s12 + $0x18] sm:$0xff]   ;;  %v3747_v13 = vld [vmem:[#allocation8 + $0x30] sm:$0xff]   ;;  %523 = vst [vmem:[#allocation2 + $0x4] sm:$0x1] %v4032_v14  ;;  %524 = vst [vmem:[#allocation2 + $0x8] sm:$0xf] %v4032_v14 }
  0x6e   : > { %v3746_v12 = vld [vmem:[#allocation8 + $0x38] sm:$0xff]   ;;  %525 = vst [vmem:[#allocation2 + $0xc] sm:$0x1] %v4032_v14  ;;  %526 = vst [vmem:[#allocation2 + $0x10] sm:$0xf] %v4032_v14  ;;  %v3748_v15 = vld [vmem:[#allocation8 + $0x28] sm:$0xff]  }
  0x6f   : > { %3375 = vmatpush3.bf16.msra.mxu0 %v3735_v1  ;;  %527 = vst [vmem:[#allocation2 + $0x14] sm:$0x1] %v4032_v14  ;;  %530 = vst [vmem:[#allocation2 + $0x20] sm:$0xf] %v4032_v14  ;;  %v3749_v16 = vld [vmem:[#allocation8 + $0x78] sm:$0xff]   ;;  %v3750_v17 = vld [vmem:[#allocation8 + $0x20] sm:$0xff]  }
  0x70   : > { %3376 = vmatprep.subr.bf16.mxu0 %v3736_v2  ;;  %531 = vst [vmem:[#allocation2 + $0x24] sm:$0x1] %v4032_v14  ;;  %532 = vst [vmem:[#allocation2 + $0x28] sm:$0xf] %v4032_v14  ;;  %3396 = vmatprep.subr.bf16.mxu1 %v3749_v16  ;;  %v3751_v18 = vld [vmem:[#allocation8 + $0x70] sm:$0xff]   ;;  %v3752_v19 = vld [vmem:[#allocation8 + $0x18] sm:$0xff]  }
  0x71   : > { %533 = vst [vmem:[#allocation2 + $0x2c] sm:$0x1] %v4032_v14  ;;  %534 = vst [vmem:[#allocation2 + $0x30] sm:$0xf] %v4032_v14  ;;  %3397 = vmatpush3.bf16.msra.mxu1 %v3749_v16  ;;  %v3753_v20 = vld [vmem:[#allocation8 + $0x68] sm:$0xff]   ;;  %v3754_v21 = vld [vmem:[#allocation8 + $0x10] sm:$0xff]  }
  0x72   : > { %535 = vst [vmem:[#allocation2 + $0x34] sm:$0x1] %v4032_v14  ;;  %536 = vst [vmem:[#allocation2 + $0x38] sm:$0xf] %v4032_v14  ;;  %3398 = vmatprep.subr.bf16.mxu1 %v3751_v18  ;;  %v3755_v22 = vld [vmem:[#allocation8 + $0x60] sm:$0xff]   ;;  %v3756_v23 = vld [vmem:[#allocation8 + $0x8] sm:$0xff]  }
  0x73   : > { %3377 = vmatpush3.bf16.msra.mxu0 %v3736_v2  ;;  %537 = vst [vmem:[#allocation2 + $0x3c] sm:$0x1] %v4032_v14  ;;  %538 = vst [vmem:[#allocation2 + $0x40] sm:$0xf] %v4032_v14  ;;  %v3757_v24 = vld [vmem:[#allocation8 + $0x58] sm:$0xff]   ;;  %v3758_v25 = vld [vmem:[#allocation8] sm:$0xff]  }
  0x74   : > { %3378 = vmatprep.subr.bf16.mxu0 %v3737_v3  ;;  %539 = vst [vmem:[#allocation2 + $0x44] sm:$0x1] %v4032_v14  ;;  %540 = vst [vmem:[#allocation2 + $0x48] sm:$0xf] %v4032_v14  ;;  %v3759_v26 = vld [vmem:[#allocation8 + $0x50] sm:$0xff]   ;;  %v4247_v27 = vld [vmem:[#allocation8 + $0xf8] sm:$0xff]  }
  0x75   : > { %541 = vst [vmem:[#allocation2 + $0x4c] sm:$0x1] %v4032_v14  ;;  %3399 = vmatpush3.bf16.msra.mxu1 %v3751_v18  ;;  %v3762_v28 = vld [vmem:[#allocation8 + $0x48] sm:$0xff]   ;;  %v3765_v29 = vld [vmem:[#allocation8 + $0x40] sm:$0xff]   ;;  %v4250_v30 = vld [vmem:[#allocation8 + $0xb8] sm:$0xff]   ;;  %s340_s11 = scalar_lea.vmem [#allocation11], %s3018_s1 }
  0x76   : > { %3400 = vmatprep.subr.bf16.mxu1 %v3753_v20  ;;  %v4253_v31 = vld [vmem:[#allocation2] sm:$0xf]  ;;  %vm627_vm1 = vsmask.f32 256  ;;  %vm638_vm3 = vsmask.f32 4352  ;;  %vm4388_vm11 = vmor %vm1175_vm9, %vm1176_vm10 }
  0x77   : > { %3379 = vmatpush3.bf16.msra.mxu0 %v3737_v3  ;;  %v4258_v32 = vld [vmem:[%s4652_s2] ss:$0 sm:$0xff]  ;;  %v757_v33 = vshrl.u32 %v4253_v31, 16  ;;  %v760_v34 = vshll.u32 %v4253_v31, 16  ;;  %v4266_v57 = vld [vmem:[#allocation2 + $0x4] sm:$0x1]  ;;  %vm4269_vm4 = vmand %vm626_vm0, %vm627_vm1 }
  0x78   : > { %3380 = vmatprep.subr.bf16.mxu0 %v3738_v5  ;;  %v766_v63 = vshll.u32 %v4266_v57, 16  ;;  %vm4279_vm5 = vmand %vm637_vm2, %vm638_vm3  ;;  %vm753_vm6 = vsmask.f32 3328  ;;  %vm754_vm7 = vsmask.f32 7440  ;;  %s2906_s21 = sshll.u32 %s340_s11, 4  ;;  %s4602_s21 = int_to_ptr.vmem [resolvable:$true] %s2906_s21 }
  0x79   : > { %3401 = vmatpush3.bf16.msra.mxu1 %v3753_v20  ;;  %v759_v38 = vrot.slane %v757_v33, 4  ;;  %v762_v39 = vrot.slane %v760_v34, 5  ;;  %vm4310_vm8 = vmor %vm753_vm6, %vm754_vm7  ;;  %s3216_s22 = sshll.u32 %s4097_s28, 9  ;;  %s2893_s16 = scalar_lea.sflag [#allocation5], %s4223_s19 }
  0x7a   : > { %3402 = vmatprep.subr.bf16.mxu1 %v3755_v22  ;;  %s4607_s1 = scalar_lea.hbm %s4657_s7, %s3216_s22  ;;  %p4698_p1 = scmp.ne.s32.totalorder %s4670_s20, 0 }
  0x7b   : > { %3381 = vmatpush3.bf16.msra.mxu0 %v3738_v5  ;;  %v763_v47 = vor.u32 %v762_v39, %v759_v38  ;;  %s4033_s28 = smov [#allocation11]  }
  0x7c   : > { %3382 = vmatprep.subr.bf16.mxu0 %v3739_v6  ;;  %s3956_s30 = sshll.u32 %s4033_s28, 4  ;;  %s3957_s30 = int_to_ptr.vmem [resolvable:$false] %s3956_s30 }
  0x7d   : > { %3403 = vmatpush3.bf16.msra.mxu1 %v3755_v22  ;;  %v4274_v62 = vrot.slane %v763_v47, 4  ;;  %s3958_s9 = scalar_lea.vmem %s3957_s30, 1024  ;;  %p3959_p13 = scmp.lt.s32.totalorder %s4602_s21, %s3957_s30 }
  0x7e   : > { %3404 = vmatprep.subr.bf16.mxu1 %v3757_v24 }
  0x7f   : > { %3383 = vmatpush3.bf16.msra.mxu0 %v3739_v6 }
  0x80   : > { %3384 = vmatprep.subr.bf16.mxu0 %v3740_v7 }
  0x81   : > { %3405 = vmatpush3.bf16.msra.mxu1 %v3757_v24 }
  0x82   : > { %3406 = vmatprep.subr.bf16.mxu1 %v3759_v26 }
  0x83   : > { %3385 = vmatpush3.bf16.msra.mxu0 %v3740_v7 }
  0x84   : > { %3386 = vmatprep.subr.bf16.mxu0 %v3741_v8 }
  0x85   : > { %3407 = vmatpush3.bf16.msra.mxu1 %v3759_v26 }
  0x86   : > { %3408 = vmatprep.subr.bf16.mxu1 %v3762_v28 }
  0x87   : > { %3387 = vmatpush3.bf16.msra.mxu0 %v3741_v8 }
  0x88   : > { %3420 = vmatprep.subr.bf16.mxu0 %v3746_v12 }
  0x89   : > { %3409 = vmatpush3.bf16.msra.mxu1 %v3762_v28 }
  0x8a   : > { %3389 = vmatmul.mubr.bf16.vlgmr.msra.gmra.mxu0 %v344_v9  ;;  %3410 = vmatprep.subr.bf16.mxu1 %v3765_v29 }
  0x8b   : > { %3392 = vmatprep.mubr.bf16.mxu0 %v346_v10  ;;  %3421 = vmatpush3.bf16.msra.mxu0 %v3746_v12 }
  0x8c   : > { %3422 = vmatprep.subr.bf16.mxu0 %v3747_v13 }
  0x8d   : > { %3411 = vmatpush3.bf16.msra.mxu1 %v3765_v29 }
  0x8e   : > { %3444 = vmatprep.subr.bf16.mxu1 %v4250_v30 }
  0x8f   : > { %3423 = vmatpush3.bf16.msra.mxu0 %v3747_v13 }
  0x90   : > { %3424 = vmatprep.subr.bf16.mxu0 %v3748_v15 }
  0x92   : > { %3393 = vmatmul.mubr.bf16.gmra.mxu0 %v348_v11 }
  0x93   : > { %3425 = vmatpush3.bf16.msra.mxu0 %v3748_v15 }
  0x94   : > { %3426 = vmatprep.subr.bf16.mxu0 %v3750_v17 }
  0x97   : > { %3427 = vmatpush3.bf16.msra.mxu0 %v3750_v17 }
  0x98   : > { %3428 = vmatprep.subr.bf16.mxu0 %v3752_v19 }
  0x9b   : > { %3429 = vmatpush3.bf16.msra.mxu0 %v3752_v19 }
  0x9c   : > { %3430 = vmatprep.subr.bf16.mxu0 %v3754_v21 }
  0x9f   : > { %3431 = vmatpush3.bf16.msra.mxu0 %v3754_v21 }
  0xa0   : > { %3432 = vmatprep.subr.bf16.mxu0 %v3756_v23 }
  0xa3   : > { %3433 = vmatpush3.bf16.msra.mxu0 %v3756_v23 }
  0xa4   : > { %3434 = vmatprep.subr.bf16.mxu0 %v3758_v25 }
  0xa7   : > { %3435 = vmatpush3.bf16.msra.mxu0 %v3758_v25 }
  0xa8   : > { %3468 = vmatprep.subr.bf16.mxu0 %v4247_v27 }
 0x14a   : > { %v3390_v35 = vpop.f32.mrf.mxu0 }
 0x14b   : > { %v488_v36 = vadd.f32 %v3390_v35, %v4258_v32 }
 0x14c   : > { %v479_v37 = vpop.f32.mrf.mxu0 }
 0x14d   : > { %v512_v40 = vmax.f32 %v488_v36, 0.0  ;;  %v480_v41 = vadd.f32 %v4258_v32, %v479_v37 }
 0x14e   : > { %v3391_v42 = vpop.f32.mrf.mxu0 }
 0x14f   : > { %v3210_v43 = vpack.c.bf16 %v512_v40, %v512_v40  ;;  %v510_v44 = vmax.f32 %v480_v41, 0.0  ;;  %v491_v45 = vadd.f32 %v3391_v42, %v4258_v32 }
 0x150   : > { %v482_v46 = vpop.f32.mrf.mxu0 }
 0x151   : > { %v577_v48 = vshrl.u32 %v3210_v43, 16  ;;  %v3208_v49 = vpack.c.bf16 %v510_v44, %v510_v44  ;;  %v513_v50 = vmax.f32 %v491_v45, 0.0  ;;  %v483_v51 = vadd.f32 %v4258_v32, %v482_v46 }
 0x152   : > { %v3394_v52 = vpop.f32.mrf.mxu0  ;;  %v580_v54 = vshll.u32 %v3210_v43, 16  ;;  %v4300_v46 = vrot.slane %v766_v63, 5 }
 0x153   : > { %v579_v53 = vrot.slane %v577_v48, 7  ;;  %v563_v55 = vshrl.u32 %v3208_v49, 16  ;;  %v3211_v56 = vpack.c.bf16 %v513_v50, %v513_v50  ;;  %v511_v59 = vmax.f32 %v483_v51, 0.0 }
 0x154   : > { %v504_v60 = vadd.f32 %v3394_v52, %v4258_v32  ;;  %v495_v61 = vpop.f32.mrf.mxu0  ;;  %v566_v3 = vshll.u32 %v3208_v49, 16 }
 0x155   : > { %v582_v0 = vor.u32 %v580_v54, %v579_v53  ;;  %v565_v2 = vrot.slane %v563_v55, 7  ;;  %v584_v4 = vshrl.u32 %v3211_v56, 16  ;;  %v587_v5 = vshll.u32 %v3211_v56, 16 }
 0x156   : > { %v3209_v6 = vpack.c.bf16 %v511_v59, %v511_v59  ;;  %v516_v7 = vmax.f32 %v504_v60, 0.0  ;;  %v496_v8 = vadd.f32 %v4258_v32, %v495_v61  ;;  %v3395_v9 = vpop.f32.mrf.mxu0 }
 0x157   : > { %v631_v10 = vsel %vm4269_vm4, 0, %v582_v0  ;;  %v568_v11 = vor.u32 %v566_v3, %v565_v2  ;;  %v586_v12 = vrot.slane %v584_v4, 7  ;;  %v507_v13 = vadd.f32 %v3395_v9, %v4258_v32  ;;  %v3824_v4 = vld [vmem:[#allocation8 + $0x228] sm:$0xff]  }
 0x158   : > { %v642_v14 = vsel %vm4279_vm5, %v631_v10, 0  ;;  %v570_v15 = vshrl.u32 %v3209_v6, 16  ;;  %v573_v16 = vshll.u32 %v3209_v6, 16  ;;  %v3214_v17 = vpack.c.bf16 %v516_v7, %v516_v7  ;;  %v498_v26 = vpop.f32.mrf.mxu0 }
 0x159   : > { %v3048_v18 = vcombine.low %v642_v14, %v642_v14  ;;  %v3049_v19 = vcombine.high %v642_v14, %v642_v14  ;;  %v629_v20 = vsel %vm4269_vm4, 0, %v568_v11  ;;  %v589_v21 = vor.u32 %v587_v5, %v586_v12 }
 0x15a   : > { %v640_v22 = vsel %vm4279_vm5, %v629_v20, 0  ;;  %v572_v23 = vrot.slane %v570_v15, 7  ;;  %v605_v24 = vshrl.u32 %v3214_v17, 16  ;;  %v608_v25 = vshll.u32 %v3214_v17, 16 }
 0x15b   : > { %709 = vst [vmem:[#allocation2 + $0x18] sm:$0xf] %v3048_v18  ;;  %710 = vst [vmem:[#allocation2 + $0x1c] sm:$0x1] %v3049_v19  ;;  %v3044_v28 = vcombine.low %v640_v22, %v640_v22  ;;  %v3045_v29 = vcombine.high %v640_v22, %v640_v22  ;;  %v632_v33 = vsel %vm4269_vm4, 0, %v589_v21  ;;  %v514_v34 = vmax.f32 %v496_v8, 0.0 }
 0x15c   : > { %v643_v35 = vsel %vm4279_vm5, %v632_v33, 0  ;;  %v575_v36 = vor.u32 %v573_v16, %v572_v23  ;;  %v607_v37 = vrot.slane %v605_v24, 7  ;;  %v517_v38 = vmax.f32 %v507_v13, 0.0 }
 0x15d   : > { %705 = vst [vmem:[#allocation2 + $0x8] sm:$0xf] %v3044_v28  ;;  %706 = vst [vmem:[#allocation2 + $0xc] sm:$0x1] %v3045_v29  ;;  %v3050_v39 = vcombine.low %v643_v35, %v643_v35  ;;  %v3051_v40 = vcombine.high %v643_v35, %v643_v35  ;;  %v3212_v41 = vpack.c.bf16 %v514_v34, %v514_v34  ;;  %v1180_v5 = vrot.slane %v4266_v57, 5  ;;  %v3778_v57 = vld [vmem:[#allocation8 + $0x98] sm:$0xff]  }
 0x15e   : > { %v499_v42 = vadd.f32 %v4258_v32, %v498_v26  ;;  %v630_v43 = vsel %vm4269_vm4, 0, %v575_v36  ;;  %v610_v44 = vor.u32 %v608_v25, %v607_v37  ;;  %v3215_v45 = vpack.c.bf16 %v517_v38, %v517_v38 }
 0x15f   : > { %711 = vst [vmem:[#allocation2 + $0x20] sm:$0xf] %v3050_v39  ;;  %712 = vst [vmem:[#allocation2 + $0x24] sm:$0x1] %v3051_v40  ;;  %v641_v47 = vsel %vm4279_vm5, %v630_v43, 0  ;;  %v591_v48 = vshrl.u32 %v3212_v41, 16  ;;  %v769_v10 = vsel %vm4310_vm8, %v4274_v62, %v4300_v46 }
 0x160   : > { %v594_v49 = vshll.u32 %v3212_v41, 16  ;;  %v515_v50 = vmax.f32 %v499_v42, 0.0  ;;  %v3046_v51 = vcombine.low %v641_v47, %v641_v47  ;;  %v3047_v52 = vcombine.high %v641_v47, %v641_v47  ;;  %v3764_v39 = vld [vmem:[#allocation8 + $0xf0] sm:$0xff]  }
 0x161   : > { %v635_v32 = vsel %vm4269_vm4, 0, %v610_v44  ;;  %v612_v53 = vshrl.u32 %v3215_v45, 16  ;;  %v593_v55 = vrot.slane %v591_v48, 7  ;;  %v615_v56 = vshll.u32 %v3215_v45, 16 }
 0x162   : > { %v646_v54 = vsel %vm4279_vm5, %v635_v32, 0  ;;  %v3213_v59 = vpack.c.bf16 %v515_v50, %v515_v50  ;;  %707 = vst [vmem:[#allocation2 + $0x10] sm:$0xf] %v3046_v51  ;;  %708 = vst [vmem:[#allocation2 + $0x14] sm:$0x1] %v3047_v52  ;;  %v3767_v52 = vld [vmem:[#allocation8 + $0xe8] sm:$0xff]  }
 0x163   : > { %v3056_v60 = vcombine.low %v646_v54, %v646_v54  ;;  %v3057_v61 = vcombine.high %v646_v54, %v646_v54  ;;  %v614_v63 = vrot.slane %v612_v53, 7  ;;  %v596_v0 = vor.u32 %v594_v49, %v593_v55  ;;  %v724_v8 = vld [vmem:[#allocation2 + $0x18] sm:$0xf]  ;;  %v4329_v19 = vld [vmem:[#allocation2 + $0x1c] sm:$0x1] }
 0x164   : > { %v598_v2 = vshrl.u32 %v3213_v59, 16  ;;  %v601_v3 = vshll.u32 %v3213_v59, 16  ;;  %v722_v7 = vld [vmem:[#allocation2 + $0x8] sm:$0xf]  ;;  %v4315_v9 = vld [vmem:[#allocation2 + $0xc] sm:$0x1] }
 0x165   : > { %717 = vst [vmem:[#allocation2 + $0x38] sm:$0xf] %v3056_v60  ;;  %718 = vst [vmem:[#allocation2 + $0x3c] sm:$0x1] %v3057_v61  ;;  %v617_v6 = vor.u32 %v615_v56, %v614_v63  ;;  %v633_v11 = vsel %vm4269_vm4, 0, %v596_v0  ;;  %v3072_v13 = vcombine.low %v4253_v31, %v722_v7  ;;  %v771_v14 = vshrl.u32 %v722_v7, 16 }
 0x166   : > { %v600_v12 = vrot.slane %v598_v2, 7  ;;  %v644_v15 = vsel %vm4279_vm5, %v633_v11, 0  ;;  %v774_v17 = vshll.u32 %v722_v7, 16  ;;  %v780_v18 = vshll.u32 %v4315_v9, 16  ;;  %v4333_v31 = vld [vmem:[#allocation2 + $0x20] sm:$0xf] }
 0x167   : > { %v636_v16 = vsel %vm4269_vm4, 0, %v617_v6  ;;  %v3052_v20 = vcombine.low %v644_v15, %v644_v15  ;;  %v3053_v21 = vcombine.high %v644_v15, %v644_v15  ;;  %3436 = vmatprep.mubr.bf16.mxu0 %v3072_v13  ;;  %v799_v26 = vshrl.u32 %v724_v8, 16 }
 0x168   : > { %v647_v22 = vsel %vm4279_vm5, %v636_v16, 0  ;;  %v603_v23 = vor.u32 %v601_v3, %v600_v12  ;;  %v802_v28 = vshll.u32 %v724_v8, 16  ;;  %v773_v34 = vrot.slane %v771_v14, 4  ;;  %v4352_v3 = vld [vmem:[#allocation2 + $0x24] sm:$0x1] }
 0x169   : > { %v3058_v24 = vcombine.low %v647_v22, %v647_v22  ;;  %v3059_v25 = vcombine.high %v647_v22, %v647_v22  ;;  %713 = vst [vmem:[#allocation2 + $0x28] sm:$0xf] %v3052_v20  ;;  %714 = vst [vmem:[#allocation2 + $0x2c] sm:$0x1] %v3053_v21  ;;  %v723_v33 = vld [vmem:[#allocation2 + $0x10] sm:$0xf] }
 0x16a   : > { %v634_v29 = vsel %vm4269_vm4, 0, %v603_v23  ;;  %v776_v35 = vrot.slane %v774_v17, 5  ;;  %v808_v36 = vshll.u32 %v4329_v19, 16  ;;  %v3073_v38 = vcombine.low %v723_v33, %v724_v8  ;;  %v4342_v42 = vld [vmem:[#allocation2 + $0x14] sm:$0x1] }
 0x16b   : > { %719 = vst [vmem:[#allocation2 + $0x40] sm:$0xf] %v3058_v24  ;;  %720 = vst [vmem:[#allocation2 + $0x44] sm:$0x1] %v3059_v25  ;;  %v645_v37 = vsel %vm4279_vm5, %v634_v29, 0  ;;  %v813_v40 = vshrl.u32 %v4333_v31, 16 }
 0x16c   : > { %v816_v41 = vshll.u32 %v4333_v31, 16  ;;  %v3054_v58 = vcombine.low %v645_v37, %v645_v37  ;;  %v3055_v43 = vcombine.high %v645_v37, %v645_v37  ;;  %v777_v44 = vor.u32 %v776_v35, %v773_v34  ;;  %v4344_v47 = vld [vmem:[#allocation2 + $0x38] sm:$0xf]  ;;  %3437 = vmatmul.mubr.bf16.vlgmr.msra.gmra.mxu0 %v3073_v38  ;;  %v3771_v20 = vld [vmem:[#allocation8 + $0xe0] sm:$0xff]   ;;  %v1152_v23 = vld [vmem:[#allocation2 + $0x8] sm:$0xe] }
 0x16d   : > { %v782_v45 = vrot.slane %v780_v18, 5  ;;  %v855_v48 = vshrl.u32 %v4344_v47, 16  ;;  %v858_v1 = vshll.u32 %v4344_v47, 16  ;;  %v785_v49 = vshrl.u32 %v723_v33, 16  ;;  %3469 = vmatpush3.bf16.msra.mxu0 %v4247_v27  ;;  %v4354_v27 = vld [vmem:[#allocation2] sm:$0xe] }
 0x16e   : > { %v788_v50 = vshll.u32 %v723_v33, 16  ;;  %715 = vst [vmem:[#allocation2 + $0x30] sm:$0xf] %v3054_v58  ;;  %716 = vst [vmem:[#allocation2 + $0x34] sm:$0x1] %v3055_v43  ;;  %v778_v51 = vrot.slane %v777_v44, 4  ;;  %3470 = vmatprep.subr.bf16.mxu0 %v3764_v39 }
 0x16f   : > { %v794_v32 = vshll.u32 %v4342_v42, 16  ;;  %v801_v53 = vrot.slane %v799_v26, 4  ;;  %v804_v54 = vrot.slane %v802_v28, 5  ;;  %v815_v55 = vrot.slane %v813_v40, 4  ;;  %v3772_v28 = vld [vmem:[#allocation8 + $0xb0] sm:$0xff]   ;;  %v3773_v43 = vld [vmem:[#allocation8 + $0xd8] sm:$0xff]  }
 0x170   : > { %v818_v56 = vrot.slane %v816_v41, 5  ;;  %v787_v59 = vrot.slane %v785_v49, 4  ;;  %v790_v60 = vrot.slane %v788_v50, 5  ;;  %v783_v61 = vsel %vm4310_vm8, %v778_v51, %v782_v45  ;;  %v726_v6 = vld [vmem:[#allocation2 + $0x28] sm:$0xf] }
 0x171   : > { %v857_v63 = vrot.slane %v855_v48, 4  ;;  %v860_v0 = vrot.slane %v858_v1, 5  ;;  %v805_v2 = vor.u32 %v804_v54, %v801_v53  ;;  %v3060_v7 = vcombine.low %v769_v10, %v783_v61  ;;  %v4361_v12 = vld [vmem:[#allocation2 + $0x2c] sm:$0x1]  ;;  %3471 = vmatpush3.bf16.msra.mxu0 %v3764_v39  ;;  %v4371_v33 = vld [vmem:[#allocation2 + $0x3c] sm:$0x1] }
 0x172   : > { %v791_v8 = vor.u32 %v790_v60, %v787_v59  ;;  %v796_v11 = vrot.slane %v794_v32, 5  ;;  %v827_v13 = vshrl.u32 %v726_v6, 16  ;;  %v830_v14 = vshll.u32 %v726_v6, 16  ;;  %3472 = vmatprep.subr.bf16.mxu0 %v3767_v52  ;;  %v3770_v39 = vld [vmem:[#allocation2 + $0x8] ss:$8 sps:$4 sm:$0xff]   ;;  %v3774_v32 = vld [vmem:[#allocation8 + $0xa8] sm:$0xff]  }
 0x173   : > { %v3074_v15 = vcombine.low %v4333_v31, %v726_v6  ;;  %v806_v16 = vrot.slane %v805_v2, 4  ;;  %3412 = vmatprep.mubr.bf16.mxu1 %v3060_v7  ;;  %v810_v18 = vrot.slane %v808_v36, 5  ;;  %v819_v21 = vor.u32 %v818_v56, %v815_v55  ;;  %v3776_v7 = vld [vmem:[#allocation8 + $0xa0] sm:$0xff]   ;;  %v3834_v61 = vld [vmem:[#allocation9 + $0x18] sm:$0xff]  }
 0x174   : > { %v792_v17 = vrot.slane %v791_v8, 4  ;;  %v836_v62 = vshll.u32 %v4361_v12, 16  ;;  %v829_v46 = vrot.slane %v827_v13, 4  ;;  %v832_v10 = vrot.slane %v830_v14, 5  ;;  %v3780_v13 = vld [vmem:[#allocation8 + $0x90] sm:$0xff]   ;;  %v3782_v14 = vld [vmem:[#allocation8 + $0x178] sm:$0xff]  }
 0x175   : > { %3440 = vmatprep.mubr.bf16.mxu0 %v3074_v15  ;;  %v861_v22 = vor.u32 %v860_v0, %v857_v63  ;;  %v3084_v24 = vrot.slane %v4354_v27, 9  ;;  %v727_v25 = vld [vmem:[#allocation2 + $0x30] sm:$0xf]  ;;  %v811_v26 = vsel %vm4310_vm8, %v806_v16, %v810_v18  ;;  %v822_v29 = vshll.u32 %v4352_v3, 16  ;;  %3473 = vmatpush3.bf16.msra.mxu0 %v3767_v52  ;;  %v4374_v38 = vld [vmem:[#allocation2 + $0x34] sm:$0x1] }
 0x176   : > { %v797_v31 = vsel %vm4310_vm8, %v792_v17, %v796_v11  ;;  %v841_v34 = vshrl.u32 %v727_v25, 16  ;;  %v844_v35 = vshll.u32 %v727_v25, 16  ;;  %v3075_v36 = vcombine.low %v727_v25, %v4344_v47  ;;  %3474 = vmatprep.subr.bf16.mxu0 %v3771_v20  ;;  %v3775_v63 = vld [vmem:[#allocation8 + $0xd0] sm:$0xff]   ;;  %v3777_v11 = vld [vmem:[#allocation8 + $0xc8] sm:$0xff]   ;;  %v1153_v17 = vld [vmem:[#allocation2 + $0x10] sm:$0xe] }
 0x177   : > { %v3061_v37 = vcombine.low %v797_v31, %v811_v26  ;;  %v820_v40 = vrot.slane %v819_v21, 4  ;;  %v833_v41 = vor.u32 %v832_v10, %v829_v46  ;;  %v838_v58 = vrot.slane %v836_v62, 5  ;;  %v3783_v15 = vld [vmem:[#allocation8 + $0x88] sm:$0xff]   ;;  %v1536_v18 = vld [vmem:[#allocation2 + $0x10] sm:$0xf] }
 0x178   : > { %v850_v44 = vshll.u32 %v4374_v38, 16  ;;  %v843_v45 = vrot.slane %v841_v34, 4  ;;  %v846_v48 = vrot.slane %v844_v35, 5  ;;  %3441 = vmatmul.mubr.bf16.gmra.mxu0 %v3075_v36  ;;  %v862_v1 = vrot.slane %v861_v22, 4  ;;  %v3781_v16 = vld [vmem:[#allocation2 + $0x18] ss:$8 sps:$4 sm:$0xff]  }
 0x179   : > { %3413 = vmatmul.mubr.bf16.vlgmr.msra.gmra.mxu1 %v3061_v37  ;;  %v864_v49 = vshll.u32 %v4371_v33, 16  ;;  %v1184_v47 = vrot.slane %v4315_v9, 5  ;;  %3484 = vmatprep.mubr.bf16.mxu0 %v3770_v39  ;;  %v824_v50 = vrot.slane %v822_v29, 5  ;;  %v834_v51 = vrot.slane %v833_v41, 4  ;;  %v1154_v21 = vld [vmem:[#allocation2 + $0x18] sm:$0xe] }
 0x17a   : > { %3445 = vmatpush3.bf16.msra.mxu1 %v4250_v30  ;;  %v3085_v52 = vrot.slane %v1152_v23, 9  ;;  %3475 = vmatpush3.bf16.msra.mxu0 %v3771_v20  ;;  %v847_v53 = vor.u32 %v846_v48, %v843_v45  ;;  %v852_v54 = vrot.slane %v850_v44, 5  ;;  %v1181_v0 = vsel %vm4388_vm11, %v3084_v24, %v1180_v5  ;;  %v3779_v5 = vld [vmem:[#allocation8 + $0xc0] sm:$0xff]   ;;  %v3785_v20 = vld [vmem:[#allocation8 + $0x170] sm:$0xff]   ;;  %v4400_v62 = vld [vmem:[#allocation2 + $0xc] sm:$0x1] }
 0x17b   : > { %3446 = vmatprep.subr.bf16.mxu1 %v3772_v28  ;;  %v866_v55 = vrot.slane %v864_v49, 5  ;;  %v825_v56 = vsel %vm4310_vm8, %v820_v40, %v824_v50  ;;  %v839_v59 = vsel %vm4310_vm8, %v834_v51, %v838_v58  ;;  %3476 = vmatprep.subr.bf16.mxu0 %v3773_v43  ;;  %v4402_v46 = vld [vmem:[#allocation2 + $0x14] sm:$0x1]  ;;  %v1817_v10 = vld [vmem:[#allocation2 + $0x10] sm:$0xe]  ;;  %v1565_v25 = vshrl.u32 %v1536_v18, 16 }
 0x17c   : > { %v3062_v9 = vcombine.low %v825_v56, %v839_v59  ;;  %v848_v60 = vrot.slane %v847_v53, 4  ;;  %v1185_v2 = vsel %vm4388_vm11, %v3085_v52, %v1184_v47  ;;  %v1534_v22 = vld [vmem:[#allocation2 + $0x8] sm:$0xf]  ;;  %v1568_v31 = vshll.u32 %v1536_v18, 16  ;;  %v3786_v36 = vld [vmem:[#allocation8 + $0x80] sm:$0xff]   ;;  %v3788_v44 = vld [vmem:[#allocation8 + $0x168] sm:$0xff]  }
 0x17d   : > { %v867_v30 = vsel %vm4310_vm8, %v862_v1, %v866_v55  ;;  %v3092_v8 = vcombine.low %v1181_v0, %v1185_v2  ;;  %v3784_v23 = vld [vmem:[#allocation2 + $0x28] ss:$8 sps:$4 sm:$0xff]   ;;  %v1188_v26 = vrot.slane %v4342_v42, 5  ;;  %v3129_v29 = vrot.slane %v1817_v10, 9  ;;  %v1155_v42 = vld [vmem:[#allocation2 + $0x20] sm:$0xe] }
 0x17e   : > { %3447 = vmatpush3.bf16.msra.mxu1 %v3772_v28  ;;  %3416 = vmatprep.mubr.bf16.mxu1 %v3062_v9  ;;  %v853_v27 = vsel %vm4310_vm8, %v848_v60, %v852_v54  ;;  %v1816_v24 = vld [vmem:[#allocation2 + $0x8] sm:$0xe]  ;;  %v3086_v28 = vrot.slane %v1153_v17, 9  ;;  %v1846_v34 = vrot.slane %v4402_v46, 5  ;;  %v1551_v37 = vshrl.u32 %v1534_v22, 16  ;;  %v3790_v60 = vld [vmem:[#allocation8 + $0x160] sm:$0xff]  }
 0x17f   : > { %3448 = vmatprep.subr.bf16.mxu1 %v3774_v32  ;;  %3477 = vmatpush3.bf16.msra.mxu0 %v3773_v43  ;;  %v3063_v6 = vcombine.low %v853_v27, %v867_v30  ;;  %v1156_v35 = vld [vmem:[#allocation2 + $0x28] sm:$0xe]  ;;  %v1554_v39 = vshll.u32 %v1534_v22, 16  ;;  %v1192_v40 = vrot.slane %v4329_v19, 5  ;;  %v3087_v41 = vrot.slane %v1154_v21, 9  ;;  %v3791_v0 = vld [vmem:[#allocation8 + $0x130] sm:$0xff]  }
 0x180   : > { %3478 = vmatprep.subr.bf16.mxu0 %v3775_v63  ;;  %v3128_v58 = vrot.slane %v1816_v24, 9  ;;  %v1842_v43 = vrot.slane %v4400_v62, 5  ;;  %v3089_v45 = vrot.slane %v1156_v35, 9  ;;  %v1200_v48 = vrot.slane %v4361_v12, 5  ;;  %v3789_v50 = vld [vmem:[#allocation8 + $0x138] sm:$0xff]  }
 0x181   : > { %3417 = vmatmul.mubr.bf16.gmra.mxu1 %v3063_v6  ;;  %v1567_v1 = vrot.slane %v1565_v25, 4  ;;  %v1570_v49 = vrot.slane %v1568_v31, 5  ;;  %v1189_v47 = vsel %vm4388_vm11, %v3086_v28, %v1188_v26  ;;  %v1847_v19 = vsel %vm4388_vm11, %v3129_v29, %v1846_v34  ;;  %v3787_v54 = vld [vmem:[#allocation2 + $0x38] ss:$8 sps:$4 sm:$0xff]   ;;  %v1157_v55 = vld [vmem:[#allocation2 + $0x30] sm:$0xe] }
 0x182   : > { %3449 = vmatpush3.bf16.msra.mxu1 %v3774_v32  ;;  %3460 = vmatprep.mubr.bf16.mxu1 %v3092_v8  ;;  %v3088_v51 = vrot.slane %v1155_v42, 9  ;;  %v1196_v52 = vrot.slane %v4352_v3, 5  ;;  %v1553_v32 = vrot.slane %v1551_v37, 4  ;;  %v1556_v53 = vrot.slane %v1554_v39, 5  ;;  %v1158_v30 = vld [vmem:[#allocation2 + $0x38] sm:$0xe] }
 0x183   : > { %3450 = vmatprep.subr.bf16.mxu1 %v3776_v7  ;;  %3479 = vmatpush3.bf16.msra.mxu0 %v3775_v63  ;;  %v1843_v12 = vsel %vm4388_vm11, %v3128_v58, %v1842_v43  ;;  %v1193_v56 = vsel %vm4388_vm11, %v3087_v41, %v1192_v40  ;;  %v1201_v9 = vsel %vm4388_vm11, %v3089_v45, %v1200_v48  ;;  %v3090_v27 = vrot.slane %v1157_v55, 9  ;;  %v4426_v17 = vld [vmem:[#allocation2 + $0x1c] sm:$0x1]  ;;  %v4428_v18 = vld [vmem:[#allocation2 + $0x24] sm:$0x1]  ;;  %v3797_v42 = vld [vmem:[#allocation8 + $0x118] sm:$0xff]  }
 0x184   : > { %3480 = vmatprep.subr.bf16.mxu0 %v3777_v11  ;;  %v3136_v59 = vcombine.low %v1843_v12, %v1847_v19  ;;  %v1571_v63 = vor.u32 %v1570_v49, %v1567_v1  ;;  %v3093_v3 = vcombine.low %v1189_v47, %v1193_v56  ;;  %v1197_v2 = vsel %vm4388_vm11, %v3088_v51, %v1196_v52  ;;  %v4438_v28 = vld [vmem:[#allocation2 + $0x2c] sm:$0x1]  ;;  %v1820_v29 = vld [vmem:[#allocation2 + $0x28] sm:$0xe]  ;;  %v4442_v37 = vld [vmem:[#allocation2 + $0x34] sm:$0x1] }
 0x185   : > { %v1557_v6 = vor.u32 %v1556_v53, %v1553_v32  ;;  %v3094_v8 = vcombine.low %v1197_v2, %v1201_v9  ;;  %v1854_v25 = vrot.slane %v4428_v18, 5  ;;  %v1850_v26 = vrot.slane %v4426_v17, 5  ;;  %v1821_v39 = vld [vmem:[#allocation2 + $0x30] sm:$0xe]  ;;  %v3796_v41 = vld [vmem:[#allocation8 + $0x148] sm:$0xff]  }
 0x186   : > { %3451 = vmatpush3.bf16.msra.mxu1 %v3776_v7  ;;  %v1574_v7 = vshll.u32 %v4402_v46, 16  ;;  %v1540_v58 = vld [vmem:[#allocation2 + $0x20] sm:$0xf]  ;;  %v2197_v43 = vld [vmem:[#allocation2 + $0x10] sm:$0xf]  ;;  %v3132_v45 = vrot.slane %v1820_v29, 9 }
 0x187   : > { %3452 = vmatprep.subr.bf16.mxu1 %v3778_v57  ;;  %3481 = vmatpush3.bf16.msra.mxu0 %v3777_v11  ;;  %v3792_v11 = vld [vmem:[#allocation8 + $0x158] sm:$0xff]   ;;  %v1558_v21 = vrot.slane %v1557_v6, 4  ;;  %v1858_v48 = vrot.slane %v4438_v28, 5  ;;  %v4449_v1 = vld [vmem:[#allocation2 + $0x3c] sm:$0x1]  ;;  %v1862_v51 = vrot.slane %v4442_v37, 5 }
 0x188   : > { %3482 = vmatprep.subr.bf16.mxu0 %v3779_v5  ;;  %v1576_v46 = vrot.slane %v1574_v7, 5  ;;  %v4451_v49 = vld [vmem:[#allocation2 + $0x38] sm:$0xe]  ;;  %v1542_v52 = vld [vmem:[#allocation2 + $0x28] sm:$0xf]  ;;  %v1596_v12 = vshll.u32 %v1540_v58, 16 }
 0x189   : > { %v2199_v47 = vld [vmem:[#allocation2 + $0x18] sm:$0xf]  ;;  %v1544_v32 = vld [vmem:[#allocation2 + $0x30] sm:$0xf]  ;;  %v2214_v55 = vshrl.u32 %v2197_v43, 16  ;;  %v2217_v56 = vshll.u32 %v2197_v43, 16 }
 0x18a   : > { %3453 = vmatpush3.bf16.msra.mxu1 %v3778_v57  ;;  %v1204_v57 = vrot.slane %v4374_v38, 5  ;;  %v1818_v38 = vld [vmem:[#allocation2 + $0x18] sm:$0xe]  ;;  %v1610_v2 = vshll.u32 %v1542_v52, 16  ;;  %v1624_v6 = vshll.u32 %v1544_v32, 16  ;;  %v3799_v7 = vld [vmem:[#allocation8 + $0x110] sm:$0xff]  }
 0x18b   : > { %3454 = vmatprep.subr.bf16.mxu1 %v3780_v13  ;;  %3483 = vmatpush3.bf16.msra.mxu0 %v3779_v5  ;;  %v3091_v5 = vrot.slane %v1158_v30, 9  ;;  %v3130_v31 = vrot.slane %v1818_v38, 9  ;;  %v1538_v53 = vld [vmem:[#allocation2 + $0x18] sm:$0xf]  ;;  %v2228_v30 = vshrl.u32 %v2199_v47, 16  ;;  %v1616_v43 = vshll.u32 %v4438_v28, 16 }
 0x18c   : > { %3516 = vmatprep.subr.bf16.mxu0 %v3782_v14  ;;  %v1602_v28 = vshll.u32 %v4428_v18, 16  ;;  %v3804_v18 = vld [vmem:[#allocation8 + $0x1e8] sm:$0xff]  }
 0x18d   : > { %v4455_v19 = vsel %vm4388_vm11, %v3130_v31, %v1850_v26  ;;  %v1626_v31 = vrot.slane %v1624_v6, 5  ;;  %v1548_v26 = vld [vmem:[#allocation2 + $0x40] sm:$0xf] }
 0x18e   : > { %3455 = vmatpush3.bf16.msra.mxu1 %v3780_v13  ;;  %3485 = vmatmul.mubr.bf16.vlgmr.msra.gmra.mxu0 %v3781_v16  ;;  %v1208_v13 = vrot.slane %v4371_v33, 5  ;;  %v1572_v16 = vrot.slane %v1571_v63, 4  ;;  %v1205_v33 = vsel %vm4388_vm11, %v3090_v27, %v1204_v57  ;;  %v2231_v63 = vshll.u32 %v2199_v47, 16 }
 0x18f   : > { %3456 = vmatprep.subr.bf16.mxu1 %v3783_v15  ;;  %3488 = vmatprep.mubr.bf16.mxu0 %v3784_v23  ;;  %v3794_v23 = vld [vmem:[#allocation8 + $0x150] sm:$0xff]   ;;  %v1621_v27 = vshrl.u32 %v1544_v32, 16  ;;  %v1866_v57 = vrot.slane %v4449_v1, 5 }
 0x190   : > { %3517 = vmatpush3.bf16.msra.mxu0 %v3782_v14  ;;  %v3793_v14 = vld [vmem:[#allocation8 + $0x128] sm:$0xff]   ;;  %v1209_v10 = vsel %vm4388_vm11, %v3091_v5, %v1208_v13  ;;  %v1577_v22 = vsel %vm4310_vm8, %v1572_v16, %v1576_v46  ;;  %v1579_v5 = vshrl.u32 %v1538_v53, 16  ;;  %v1582_v13 = vshll.u32 %v1538_v53, 16  ;;  %v4468_v16 = vld [vmem:[#allocation2 + $0x14] sm:$0x1]  ;;  %v3800_v46 = vld [vmem:[#allocation8 + $0x1f8] sm:$0xff]  }
 0x191   : > { %3518 = vmatprep.subr.bf16.mxu0 %v3785_v20  ;;  %v3095_v34 = vcombine.low %v1205_v33, %v1209_v10  ;;  %v2230_v10 = vrot.slane %v2228_v30, 4 }
 0x192   : > { %3457 = vmatpush3.bf16.msra.mxu1 %v3783_v15  ;;  %v1560_v15 = vshll.u32 %v4400_v62, 16 }
 0x193   : > { %3458 = vmatprep.subr.bf16.mxu1 %v3786_v36 }
 0x194   : > { %3519 = vmatpush3.bf16.msra.mxu0 %v3785_v20  ;;  %v1819_v20 = vld [vmem:[#allocation2 + $0x20] sm:$0xe]  ;;  %v1562_v62 = vrot.slane %v1560_v15, 5  ;;  %v1598_v15 = vrot.slane %v1596_v12, 5 }
 0x195   : > { %3520 = vmatprep.subr.bf16.mxu0 %v3788_v44  ;;  %v3131_v24 = vrot.slane %v1819_v20, 9  ;;  %v2216_v20 = vrot.slane %v2214_v55, 4  ;;  %v1588_v55 = vshll.u32 %v4426_v17, 16 }
 0x196   : > { %3459 = vmatpush3.bf16.msra.mxu1 %v3786_v36  ;;  %3489 = vmatmul.mubr.bf16.gmra.mxu0 %v3787_v54  ;;  %v1563_v35 = vsel %vm4310_vm8, %v1558_v21, %v1562_v62  ;;  %v3795_v36 = vld [vmem:[#allocation8 + $0x120] sm:$0xff]   ;;  %v1593_v54 = vshrl.u32 %v1540_v58, 16  ;;  %v2219_v21 = vrot.slane %v2217_v56, 5  ;;  %v2233_v62 = vrot.slane %v2231_v63, 5 }
 0x197   : > { %3492 = vmatprep.subr.bf16.mxu1 %v3789_v50  ;;  %3532 = vmatprep.mubr.bf16.mxu0 %v3136_v59  ;;  %v3116_v40 = vcombine.low %v1563_v35, %v1577_v22  ;;  %v3798_v59 = vld [vmem:[#allocation8 + $0x140] sm:$0xff]   ;;  %v1546_v22 = vld [vmem:[#allocation2 + $0x38] sm:$0xf]  ;;  %v1584_v35 = vrot.slane %v1582_v13, 5  ;;  %v1604_v13 = vrot.slane %v1602_v28, 5 }
 0x198   : > { %3521 = vmatpush3.bf16.msra.mxu0 %v3788_v44  ;;  %v4446_v44 = vsel %vm4388_vm11, %v3131_v24, %v1854_v25  ;;  %v1612_v24 = vrot.slane %v1610_v2, 5  ;;  %v1623_v25 = vrot.slane %v1621_v27, 4  ;;  %v2220_v58 = vor.u32 %v2219_v21, %v2216_v20  ;;  %v2211_v28 = vld [vmem:[#allocation2 + $0x48] sm:$0xf] }
 0x199   : > { %3461 = vmatmul.mubr.bf16.vlgmr.msra.gmra.mxu1 %v3093_v3  ;;  %3522 = vmatprep.subr.bf16.mxu0 %v3790_v60  ;;  %v3137_v9 = vcombine.low %v4455_v19, %v4446_v44  ;;  %v4461_v3 = vld [vmem:[#allocation2 + $0x40] sm:$0xe]  ;;  %v1638_v47 = vshll.u32 %v1546_v22, 16 }
 0x19a   : > { %3464 = vmatprep.mubr.bf16.mxu1 %v3094_v8  ;;  %3493 = vmatpush3.bf16.msra.mxu1 %v3789_v50  ;;  %v3133_v50 = vrot.slane %v1821_v39, 9  ;;  %v1859_v8 = vsel %vm4388_vm11, %v3132_v45, %v1858_v48  ;;  %v3135_v33 = vrot.slane %v4461_v3, 9  ;;  %v3801_v39 = vld [vmem:[#allocation8 + $0x108] sm:$0xff]   ;;  %v1635_v48 = vshrl.u32 %v1546_v22, 16 }
 0x19b   : > { %3494 = vmatprep.subr.bf16.mxu1 %v3791_v0  ;;  %v4476_v45 = vld [vmem:[#allocation2 + $0x1c] sm:$0x1]  ;;  %v1627_v53 = vor.u32 %v1626_v31, %v1623_v25  ;;  %v2221_v63 = vrot.slane %v2220_v58, 4  ;;  %v1640_v2 = vrot.slane %v1638_v47, 5  ;;  %v2201_v58 = vld [vmem:[#allocation2 + $0x20] sm:$0xf] }
 0x19c   : > { %3523 = vmatpush3.bf16.msra.mxu0 %v3790_v60  ;;  %v3134_v60 = vrot.slane %v4451_v49, 9  ;;  %v1863_v38 = vsel %vm4388_vm11, %v3133_v50, %v1862_v51  ;;  %v1649_v50 = vshrl.u32 %v1548_v26, 16  ;;  %v3802_v51 = vld [vmem:[#allocation8 + $0x1f0] sm:$0xff]   ;;  %v2237_v3 = vshll.u32 %v4476_v45, 16 }
 0x19d   : > { %3524 = vmatprep.subr.bf16.mxu0 %v3792_v11 }
 0x19e   : > { %3495 = vmatpush3.bf16.msra.mxu1 %v3791_v0  ;;  %v1607_v0 = vshrl.u32 %v1542_v52, 16  ;;  %v2234_v52 = vor.u32 %v2233_v62, %v2230_v10  ;;  %v1651_v27 = vrot.slane %v1649_v50, 4  ;;  %v1867_v19 = vsel %vm4388_vm11, %v3134_v60, %v1866_v57  ;;  %v3809_v50 = vld [vmem:[#allocation8 + $0x1a8] sm:$0xff]  }
 0x19f   : > { %3496 = vmatprep.subr.bf16.mxu1 %v3793_v14  ;;  %v2239_v21 = vrot.slane %v2237_v3, 5 }
 0x1a0   : > { %3525 = vmatpush3.bf16.msra.mxu0 %v3792_v11  ;;  %v4465_v11 = vld [vmem:[#allocation2 + $0x44] sm:$0x1]  ;;  %v2235_v6 = vrot.slane %v2234_v52, 4 }
 0x1a1   : > { %3465 = vmatmul.mubr.bf16.gmra.mxu1 %v3095_v34  ;;  %3526 = vmatprep.subr.bf16.mxu0 %v3794_v23  ;;  %v1870_v29 = vrot.slane %v4465_v11, 5  ;;  %v1581_v34 = vrot.slane %v1579_v5, 4  ;;  %v1658_v57 = vshll.u32 %v4465_v11, 16  ;;  %v3807_v11 = vld [vmem:[#allocation8 + $0x1b0] sm:$0xff]  }
 0x1a2   : > { %3497 = vmatpush3.bf16.msra.mxu1 %v3793_v14  ;;  %3508 = vmatprep.mubr.bf16.mxu1 %v3116_v40  ;;  %v1595_v14 = vrot.slane %v1593_v54, 4  ;;  %v3138_v40 = vcombine.low %v1859_v8, %v1863_v38  ;;  %v1630_v54 = vshll.u32 %v4442_v37, 16  ;;  %v1637_v37 = vrot.slane %v1635_v48, 4 }
 0x1a3   : > { %3498 = vmatprep.subr.bf16.mxu1 %v3795_v36  ;;  %v1585_v12 = vor.u32 %v1584_v35, %v1581_v34  ;;  %v1628_v8 = vrot.slane %v1627_v53, 4  ;;  %v2240_v10 = vsel %vm4310_vm8, %v2235_v6, %v2239_v21 }
 0x1a4   : > { %3527 = vmatpush3.bf16.msra.mxu0 %v3794_v23  ;;  %v1609_v23 = vrot.slane %v1607_v0, 4  ;;  %v1618_v0 = vrot.slane %v1616_v43, 5  ;;  %v1632_v44 = vrot.slane %v1630_v54, 5  ;;  %v1641_v38 = vor.u32 %v1640_v2, %v1637_v37 }
 0x1a5   : > { %3528 = vmatprep.subr.bf16.mxu0 %v3796_v41  ;;  %v1586_v5 = vrot.slane %v1585_v12, 4  ;;  %v2242_v54 = vshrl.u32 %v2201_v58, 16  ;;  %v2245_v12 = vshll.u32 %v2201_v58, 16 }
 0x1a6   : > { %3499 = vmatpush3.bf16.msra.mxu1 %v3795_v36  ;;  %v2223_v36 = vshll.u32 %v4468_v16, 16  ;;  %v1613_v32 = vor.u32 %v1612_v24, %v1609_v23  ;;  %v1633_v22 = vsel %vm4310_vm8, %v1628_v8, %v1632_v44  ;;  %v1642_v35 = vrot.slane %v1641_v38, 4  ;;  %v4513_v8 = vld [vmem:[#allocation2 + $0x3c] sm:$0x1] }
 0x1a7   : > { %3500 = vmatprep.subr.bf16.mxu1 %v3797_v42  ;;  %v2247_v6 = vrot.slane %v2245_v12, 5  ;;  %v3813_v44 = vld [vmem:[#allocation8 + $0x1c8] sm:$0xff]  }
 0x1a8   : > { %3529 = vmatpush3.bf16.msra.mxu0 %v3796_v41  ;;  %v1599_v41 = vor.u32 %v1598_v15, %v1595_v14  ;;  %v2225_v56 = vrot.slane %v2223_v36, 5  ;;  %v1590_v14 = vrot.slane %v1588_v55, 5  ;;  %v3805_v15 = vld [vmem:[#allocation8 + $0x1b8] sm:$0xff]   ;;  %v3811_v55 = vld [vmem:[#allocation8 + $0x1d0] sm:$0xff]  }
 0x1a9   : > { %3530 = vmatprep.subr.bf16.mxu0 %v3798_v59 }
 0x1aa   : > { %3501 = vmatpush3.bf16.msra.mxu1 %v3797_v42  ;;  %v1652_v42 = vshll.u32 %v1548_v26, 16  ;;  %v1600_v30 = vrot.slane %v1599_v41, 4  ;;  %v2226_v20 = vsel %vm4310_vm8, %v2221_v63, %v2225_v56  ;;  %v1591_v23 = vsel %vm4310_vm8, %v1586_v5, %v1590_v14  ;;  %v2203_v26 = vld [vmem:[#allocation2 + $0x28] sm:$0xf]  ;;  %v3810_v56 = vld [vmem:[#allocation2 + $0x10] ss:$8 sps:$4 sm:$0xff]  }
 0x1ab   : > { %3502 = vmatprep.subr.bf16.mxu1 %v3799_v7  ;;  %v3160_v24 = vcombine.low %v2226_v20, %v2240_v10  ;;  %v3808_v41 = vld [vmem:[#allocation8 + $0x1d8] sm:$0xff]   ;;  %v2256_v43 = vshrl.u32 %v2203_v26, 16  ;;  %v2259_v48 = vshll.u32 %v2203_v26, 16  ;;  %v2315_v5 = vshll.u32 %v2211_v28, 16  ;;  %v3815_v10 = vld [vmem:[#allocation8 + $0x1c0] sm:$0xff]  }
 0x1ac   : > { %3531 = vmatpush3.bf16.msra.mxu0 %v3798_v59  ;;  %v3803_v59 = vld [vmem:[#allocation8 + $0x100] sm:$0xff]   ;;  %v1654_v17 = vrot.slane %v1652_v42, 5  ;;  %v1605_v49 = vsel %vm4310_vm8, %v1600_v30, %v1604_v13  ;;  %v4517_v13 = vld [vmem:[#allocation2 + $0x24] sm:$0x1] }
 0x1ad   : > { %3564 = vmatprep.subr.bf16.mxu0 %v3800_v46  ;;  %v3117_v25 = vcombine.low %v1591_v23, %v1605_v49  ;;  %v2261_v30 = vrot.slane %v2259_v48, 5  ;;  %v2317_v23 = vrot.slane %v2315_v5, 5  ;;  %v2509_v5 = vrot.slane %v4476_v45, 5  ;;  %v3828_v45 = vld [vmem:[#allocation8 + $0x208] sm:$0xff]  }
 0x1ae   : > { %3503 = vmatpush3.bf16.msra.mxu1 %v3799_v7  ;;  %v1614_v7 = vrot.slane %v1613_v32, 4  ;;  %v1655_v60 = vor.u32 %v1654_v17, %v1651_v27  ;;  %v2209_v17 = vld [vmem:[#allocation2 + $0x40] sm:$0xf] }
 0x1af   : > { %3533 = vmatmul.mubr.bf16.vlgmr.msra.gmra.mxu0 %v3137_v9  ;;  %3504 = vmatprep.subr.bf16.mxu1 %v3801_v39  ;;  %v1871_v9 = vsel %vm4388_vm11, %v3135_v33, %v1870_v29  ;;  %v2205_v29 = vld [vmem:[#allocation2 + $0x30] sm:$0xf]  ;;  %v2298_v20 = vshrl.u32 %v2209_v17, 16  ;;  %v2301_v21 = vshll.u32 %v2209_v17, 16 }
 0x1b0   : > { %3536 = vmatprep.mubr.bf16.mxu0 %v3138_v40  ;;  %3565 = vmatpush3.bf16.msra.mxu0 %v3800_v46  ;;  %v1644_v46 = vshll.u32 %v4449_v1, 16  ;;  %v3139_v33 = vcombine.low %v1867_v19, %v1871_v9  ;;  %v1619_v62 = vsel %vm4310_vm8, %v1614_v7, %v1618_v0  ;;  %v3806_v1 = vld [vmem:[#allocation8 + $0x1e0] sm:$0xff]   ;;  %v1656_v36 = vrot.slane %v1655_v60, 4  ;;  %v2207_v40 = vld [vmem:[#allocation2 + $0x38] sm:$0xf] }
 0x1b1   : > { %3566 = vmatprep.subr.bf16.mxu0 %v3802_v51  ;;  %v3118_v34 = vcombine.low %v1619_v62, %v1633_v22  ;;  %v2270_v47 = vshrl.u32 %v2205_v29, 16  ;;  %v2273_v42 = vshll.u32 %v2205_v29, 16  ;;  %v2287_v52 = vshll.u32 %v2207_v40, 16  ;;  %v3812_v0 = vld [vmem:[#allocation8 + $0x1a0] sm:$0xff]   ;;  %v4515_v19 = vld [vmem:[#allocation2 + $0x2c] sm:$0x1] }
 0x1b2   : > { %3505 = vmatpush3.bf16.msra.mxu1 %v3801_v39  ;;  %v1646_v31 = vrot.slane %v1644_v46, 5  ;;  %v1660_v39 = vrot.slane %v1658_v57, 5  ;;  %v4511_v7 = vld [vmem:[#allocation2 + $0x34] sm:$0x1]  ;;  %v2312_v9 = vshrl.u32 %v2211_v28, 16  ;;  %v3814_v46 = vld [vmem:[#allocation8 + $0x198] sm:$0xff]  }
 0x1b3   : > { %3506 = vmatprep.subr.bf16.mxu1 %v3803_v59  ;;  %v2272_v63 = vrot.slane %v2270_v47, 4  ;;  %v2275_v37 = vrot.slane %v2273_v42, 5  ;;  %v2289_v27 = vrot.slane %v2287_v52, 5  ;;  %v2279_v38 = vshll.u32 %v4511_v7, 16  ;;  %v4523_v22 = vld [vmem:[#allocation2 + $0x4c] sm:$0x1] }
 0x1b4   : > { %3567 = vmatpush3.bf16.msra.mxu0 %v3802_v51  ;;  %v2284_v51 = vshrl.u32 %v2207_v40, 16  ;;  %v1647_v32 = vsel %vm4310_vm8, %v1642_v35, %v1646_v31  ;;  %v1661_v53 = vsel %vm4310_vm8, %v1656_v36, %v1660_v39  ;;  %v2293_v57 = vshll.u32 %v4513_v8, 16  ;;  %v4525_v39 = vld [vmem:[#allocation2 + $0x44] sm:$0x1]  ;;  %v3817_v42 = vld [vmem:[#allocation8 + $0x188] sm:$0xff]  }
 0x1b5   : > { %3568 = vmatprep.subr.bf16.mxu0 %v3804_v18  ;;  %v3119_v3 = vcombine.low %v1647_v32, %v1661_v53  ;;  %v2276_v49 = vor.u32 %v2275_v37, %v2272_v63  ;;  %v2251_v62 = vshll.u32 %v4517_v13, 16  ;;  %v2300_v31 = vrot.slane %v2298_v20, 4  ;;  %v2479_v37 = vld [vmem:[#allocation2 + $0x10] sm:$0xe] }
 0x1b6   : > { %3507 = vmatpush3.bf16.msra.mxu1 %v3803_v59  ;;  %v2258_v59 = vrot.slane %v2256_v43, 4  ;;  %v2286_v2 = vrot.slane %v2284_v51, 4  ;;  %v2303_v26 = vrot.slane %v2301_v21, 5  ;;  %v2295_v36 = vrot.slane %v2293_v57, 5  ;;  %v3821_v17 = vld [vmem:[#allocation2 + $0x30] ss:$8 sps:$4 sm:$0xff]  }
 0x1b7   : > { %3537 = vmatmul.mubr.bf16.gmra.mxu0 %v3139_v33  ;;  %3540 = vmatprep.subr.bf16.mxu1 %v3805_v15  ;;  %v2277_v29 = vrot.slane %v2276_v49, 4  ;;  %v2321_v58 = vshll.u32 %v4523_v22, 16  ;;  %v2253_v43 = vrot.slane %v2251_v62, 5  ;;  %v3825_v21 = vld [vmem:[#allocation8 + $0x220] sm:$0xff]   ;;  %v3827_v49 = vld [vmem:[#allocation8 + $0x210] sm:$0xff]  }
 0x1b8   : > { %3569 = vmatpush3.bf16.msra.mxu0 %v3804_v18  ;;  %3580 = vmatprep.mubr.bf16.mxu0 %v3160_v24  ;;  %v2244_v18 = vrot.slane %v2242_v54, 4  ;;  %v2262_v14 = vor.u32 %v2261_v30, %v2258_v59  ;;  %v2290_v60 = vor.u32 %v2289_v27, %v2286_v2  ;;  %v3816_v24 = vld [vmem:[#allocation8 + $0x190] sm:$0xff]   ;;  %v2304_v47 = vor.u32 %v2303_v26, %v2300_v31  ;;  %v3818_v59 = vld [vmem:[#allocation8 + $0x180] sm:$0xff]   ;;  %v2484_v57 = vld [vmem:[#allocation2 + $0x38] sm:$0xe] }
 0x1b9   : > { %3509 = vmatmul.mubr.bf16.vlgmr.msra.gmra.mxu1 %v3117_v25  ;;  %3570 = vmatprep.subr.bf16.mxu0 %v3806_v1  ;;  %v3819_v2 = vld [vmem:[#allocation2 + $0x20] ss:$8 sps:$4 sm:$0xff]   ;;  %v2513_v26 = vrot.slane %v4517_v13, 5 }
 0x1ba   : > { %3512 = vmatprep.mubr.bf16.mxu1 %v3118_v34  ;;  %3541 = vmatpush3.bf16.msra.mxu1 %v3805_v15  ;;  %v2265_v15 = vshll.u32 %v4515_v19, 16  ;;  %v2248_v33 = vor.u32 %v2247_v6, %v2244_v18  ;;  %v2263_v25 = vrot.slane %v2262_v14, 4  ;;  %v2281_v34 = vrot.slane %v2279_v38, 5  ;;  %v3822_v27 = vld [vmem:[#allocation8 + $0x230] sm:$0xff]   ;;  %v2480_v18 = vld [vmem:[#allocation2 + $0x18] sm:$0xe] }
 0x1bb   : > { %3542 = vmatprep.subr.bf16.mxu1 %v3807_v11  ;;  %v2291_v35 = vrot.slane %v2290_v60, 4  ;;  %v3172_v6 = vrot.slane %v2479_v37, 9  ;;  %v2482_v38 = vld [vmem:[#allocation2 + $0x28] sm:$0xe]  ;;  %v2483_v60 = vld [vmem:[#allocation2 + $0x30] sm:$0xe] }
 0x1bc   : > { %3571 = vmatpush3.bf16.msra.mxu0 %v3806_v1  ;;  %v2314_v1 = vrot.slane %v2312_v9, 4  ;;  %v2249_v40 = vrot.slane %v2248_v33, 4  ;;  %v2282_v51 = vsel %vm4310_vm8, %v2277_v29, %v2281_v34  ;;  %v3173_v9 = vrot.slane %v2480_v18, 9  ;;  %v3829_v33 = vld [vmem:[#allocation8 + $0x200] sm:$0xff]   ;;  %v2486_v34 = vld [vmem:[#allocation2 + $0x48] sm:$0xe] }
 0x1bd   : > { %3572 = vmatprep.subr.bf16.mxu0 %v3808_v41  ;;  %v2296_v52 = vsel %vm4310_vm8, %v2291_v35, %v2295_v36  ;;  %v3175_v62 = vrot.slane %v2482_v38, 9  ;;  %v2485_v36 = vld [vmem:[#allocation2 + $0x40] sm:$0xe] }
 0x1be   : > { %3543 = vmatpush3.bf16.msra.mxu1 %v3807_v11  ;;  %v2267_v11 = vrot.slane %v2265_v15, 5  ;;  %v2254_v32 = vsel %vm4310_vm8, %v2249_v40, %v2253_v43  ;;  %v3162_v12 = vcombine.low %v2282_v51, %v2296_v52  ;;  %v3823_v15 = vld [vmem:[#allocation2 + $0x40] ss:$8 sps:$4 sm:$0xff]   ;;  %v2510_v20 = vsel %vm4388_vm11, %v3173_v9, %v2509_v5 }
 0x1bf   : > { %3544 = vmatprep.subr.bf16.mxu1 %v3809_v50  ;;  %v3179_v40 = vrot.slane %v2486_v34, 9  ;;  %v3178_v13 = vrot.slane %v2485_v36, 9  ;;  %v2533_v43 = vrot.slane %v4523_v22, 5  ;;  %v3831_v51 = vld [vmem:[#allocation9 + $0x30] sm:$0xff]   ;;  %v3833_v22 = vld [vmem:[#allocation9 + $0x20] sm:$0xff]  }
 0x1c0   : > { %3573 = vmatpush3.bf16.msra.mxu0 %v3808_v41  ;;  %v2318_v41 = vor.u32 %v2317_v23, %v2314_v1  ;;  %v2268_v48 = vsel %vm4310_vm8, %v2263_v25, %v2267_v11  ;;  %v2517_v1 = vrot.slane %v4515_v19, 5  ;;  %v3176_v23 = vrot.slane %v2483_v60, 9 }
 0x1c1   : > { %3513 = vmatmul.mubr.bf16.gmra.mxu1 %v3119_v3  ;;  %3574 = vmatprep.subr.bf16.mxu0 %v3811_v55  ;;  %v3161_v53 = vcombine.low %v2254_v32, %v2268_v48  ;;  %v3820_v3 = vld [vmem:[#allocation8 + $0x238] sm:$0xff]   ;;  %v3177_v25 = vrot.slane %v2484_v57, 9  ;;  %v2525_v11 = vrot.slane %v4513_v8, 5  ;;  %v3835_v32 = vld [vmem:[#allocation9 + $0x10] sm:$0xff]  }
 0x1c2   : > { %3545 = vmatpush3.bf16.msra.mxu1 %v3809_v50  ;;  %3556 = vmatprep.mubr.bf16.mxu1 %v3810_v56  ;;  %v2307_v50 = vshll.u32 %v4525_v39, 16  ;;  %v2319_v54 = vrot.slane %v2318_v41, 4  ;;  %v2323_v56 = vrot.slane %v2321_v58, 5  ;;  %v2518_v29 = vsel %vm4388_vm11, %v3175_v62, %v2517_v1 }
 0x1c3   : > { %3546 = vmatprep.subr.bf16.mxu1 %v3812_v0  ;;  %v2526_v19 = vsel %vm4388_vm11, %v3177_v25, %v2525_v11  ;;  %v2529_v58 = vrot.slane %v4525_v39, 5  ;;  %v3832_v39 = vld [vmem:[#allocation9 + $0x28] sm:$0xff]  }
 0x1c4   : > { %3575 = vmatpush3.bf16.msra.mxu0 %v3811_v55  ;;  %v2305_v55 = vrot.slane %v2304_v47, 4  ;;  %v2309_v28 = vrot.slane %v2307_v50, 5  ;;  %v2324_v63 = vsel %vm4310_vm8, %v2319_v54, %v2323_v56  ;;  %v2534_v47 = vsel %vm4388_vm11, %v3179_v40, %v2533_v43  ;;  %v3836_v54 = vld [vmem:[#allocation9 + $0x8] sm:$0xff]  }
 0x1c5   : > { %3576 = vmatprep.subr.bf16.mxu0 %v3813_v44  ;;  %v2530_v48 = vsel %vm4388_vm11, %v3178_v13, %v2529_v58 }
 0x1c6   : > { %3547 = vmatpush3.bf16.msra.mxu1 %v3812_v0  ;;  %v2310_v30 = vsel %vm4310_vm8, %v2305_v55, %v2309_v28  ;;  %v3183_v50 = vcombine.low %v2530_v48, %v2534_v47  ;;  %v3837_v55 = vld [vmem:[#allocation9] sm:$0xff]  }
 0x1c7   : > { %3548 = vmatprep.subr.bf16.mxu1 %v3814_v46  ;;  %v3163_v0 = vcombine.low %v2310_v30, %v2324_v63 }
 0x1c8   : > { %3577 = vmatpush3.bf16.msra.mxu0 %v3813_v44  ;;  %v2505_v44 = vrot.slane %v4468_v16, 5  ;;  %v3826_v16 = vld [vmem:[#allocation8 + $0x218] sm:$0xff]  }
 0x1c9   : > { %3578 = vmatprep.subr.bf16.mxu0 %v3815_v10 }
 0x1ca   : > { %3549 = vmatpush3.bf16.msra.mxu1 %v3814_v46  ;;  %v2506_v14 = vsel %vm4388_vm11, %v3172_v6, %v2505_v44 }
 0x1cb   : > { %3550 = vmatprep.subr.bf16.mxu1 %v3816_v24  ;;  %v3180_v46 = vcombine.low %v2506_v14, %v2510_v20 }
 0x1cc   : > { %3579 = vmatpush3.bf16.msra.mxu0 %v3815_v10  ;;  %v2481_v10 = vld [vmem:[#allocation2 + $0x20] sm:$0xe] }
 0x1cd   : > { %v3174_v31 = vrot.slane %v2481_v10, 9 }
 0x1ce   : > { %3551 = vmatpush3.bf16.msra.mxu1 %v3816_v24  ;;  %v2521_v24 = vrot.slane %v4511_v7, 5 }
 0x1cf   : > { %3581 = vmatmul.mubr.bf16.vlgmr.msra.gmra.mxu0 %v3161_v53  ;;  %3552 = vmatprep.subr.bf16.mxu1 %v3817_v42  ;;  %v2514_v7 = vsel %vm4388_vm11, %v3174_v31, %v2513_v26 }
 0x1d0   : > { %3584 = vmatprep.mubr.bf16.mxu0 %v3162_v12  ;;  %v2522_v35 = vsel %vm4388_vm11, %v3176_v23, %v2521_v24  ;;  %v3181_v8 = vcombine.low %v2514_v7, %v2518_v29 }
 0x1d1   : > { %v3182_v41 = vcombine.low %v2522_v35, %v2526_v19 }
 0x1d2   : > { %3553 = vmatpush3.bf16.msra.mxu1 %v3817_v42  ;;  %v3830_v42 = vld [vmem:[#allocation9 + $0x38] sm:$0xff]  }
 0x1d3   : > { %3554 = vmatprep.subr.bf16.mxu1 %v3818_v59  ;;  %3612 = vmatprep.subr.bf16.mxu0 %v3830_v42 }
 0x1d4   : > { %3613 = vmatpush3.bf16.msra.mxu0 %v3830_v42 }
 0x1d5   : > { %3614 = vmatprep.subr.bf16.mxu0 %v3831_v51 }
 0x1d6   : > { %3555 = vmatpush3.bf16.msra.mxu1 %v3818_v59 }
 0x1d7   : > { %3585 = vmatmul.mubr.bf16.gmra.mxu0 %v3163_v0  ;;  %3588 = vmatprep.subr.bf16.mxu1 %v3820_v3 }
 0x1d8   : > { %3615 = vmatpush3.bf16.msra.mxu0 %v3831_v51 }
 0x1d9   : > { %3557 = vmatmul.mubr.bf16.vlgmr.msra.gmra.mxu1 %v3819_v2  ;;  %3616 = vmatprep.subr.bf16.mxu0 %v3832_v39 }
 0x1da   : > { %3560 = vmatprep.mubr.bf16.mxu1 %v3821_v17  ;;  %3589 = vmatpush3.bf16.msra.mxu1 %v3820_v3 }
 0x1db   : > { %3590 = vmatprep.subr.bf16.mxu1 %v3822_v27 }
 0x1dc   : > { %3617 = vmatpush3.bf16.msra.mxu0 %v3832_v39 }
 0x1dd   : > { %3618 = vmatprep.subr.bf16.mxu0 %v3833_v22 }
 0x1de   : > { %3591 = vmatpush3.bf16.msra.mxu1 %v3822_v27 }
 0x1df   : > { %3592 = vmatprep.subr.bf16.mxu1 %v3824_v4 }
 0x1e0   : > { %3619 = vmatpush3.bf16.msra.mxu0 %v3833_v22 }
 0x1e1   : > { %3561 = vmatmul.mubr.bf16.gmra.mxu1 %v3823_v15  ;;  %3620 = vmatprep.subr.bf16.mxu0 %v3834_v61 }
 0x1e2   : > { %3593 = vmatpush3.bf16.msra.mxu1 %v3824_v4  ;;  %3604 = vmatprep.mubr.bf16.mxu1 %v3180_v46 }
 0x1e3   : > { %3594 = vmatprep.subr.bf16.mxu1 %v3825_v21 }
 0x1e4   : > { %3621 = vmatpush3.bf16.msra.mxu0 %v3834_v61 }
 0x1e5   : > { %3622 = vmatprep.subr.bf16.mxu0 %v3835_v32 }
 0x1e6   : > { %3595 = vmatpush3.bf16.msra.mxu1 %v3825_v21 }
 0x1e7   : > { %3596 = vmatprep.subr.bf16.mxu1 %v3826_v16 }
 0x1e8   : > { %3623 = vmatpush3.bf16.msra.mxu0 %v3835_v32 }
 0x1e9   : > { %3624 = vmatprep.subr.bf16.mxu0 %v3836_v54 }
 0x1ea   : > { %3597 = vmatpush3.bf16.msra.mxu1 %v3826_v16 }
 0x1eb   : > { %3598 = vmatprep.subr.bf16.mxu1 %v3827_v49 }
 0x1ec   : > { %3625 = vmatpush3.bf16.msra.mxu0 %v3836_v54 }
 0x1ed   : > { %3626 = vmatprep.subr.bf16.mxu0 %v3837_v55 }
 0x1ee   : > { %3599 = vmatpush3.bf16.msra.mxu1 %v3827_v49 }
 0x1ef   : > { %3600 = vmatprep.subr.bf16.mxu1 %v3828_v45 }
 0x1f0   : > { %3627 = vmatpush3.bf16.msra.mxu0 %v3837_v55 }
 0x1f2   : > { %3601 = vmatpush3.bf16.msra.mxu1 %v3828_v45 }
 0x1f3   : > { %3602 = vmatprep.subr.bf16.mxu1 %v3829_v33 }
 0x1f6   : > { %3603 = vmatpush3.bf16.msra.mxu1 %v3829_v33 }
 0x1f7   : > { %3636 = vmatprep.subr.bf16.mxu1 %v3830_v42 }
 0x1f9   : > { %3605 = vmatmul.mubr.bf16.vlgmr.msra.gmra.mxu1 %v3181_v8 }
 0x1fa   : > { %3608 = vmatprep.mubr.bf16.mxu1 %v3182_v41  ;;  %3644 = vmatpush3.bf16.msra.mxu1 %v3830_v42 }
 0x1fb   : > { %3637 = vmatprep.subr.bf16.mxu1 %v3831_v51 }
 0x1fe   : > { %3645 = vmatpush3.bf16.msra.mxu1 %v3831_v51 }
 0x1ff   : > { %3638 = vmatprep.subr.bf16.mxu1 %v3832_v39 }
 0x201   : > { %3609 = vmatmul.mubr.bf16.gmra.mxu1 %v3183_v50 }
 0x202   : > { %3646 = vmatpush3.bf16.msra.mxu1 %v3832_v39 }
 0x203   : > { %3639 = vmatprep.subr.bf16.mxu1 %v3833_v22 }
 0x206   : > { %3647 = vmatpush3.bf16.msra.mxu1 %v3833_v22 }
 0x207   : > { %3640 = vmatprep.subr.bf16.mxu1 %v3834_v61 }
 0x20a   : > { %3648 = vmatpush3.bf16.msra.mxu1 %v3834_v61 }
 0x20b   : > { %3641 = vmatprep.subr.bf16.mxu1 %v3835_v32 }
 0x20e   : > { %3649 = vmatpush3.bf16.msra.mxu1 %v3835_v32 }
 0x20f   : > { %3642 = vmatprep.subr.bf16.mxu1 %v3836_v54 }
 0x212   : > { %3650 = vmatpush3.bf16.msra.mxu1 %v3836_v54 }
 0x213   : > { %3643 = vmatprep.subr.bf16.mxu1 %v3837_v55 }
 0x216   : > { %3651 = vmatpush3.bf16.msra.mxu1 %v3837_v55 }
 0x22c   : > { %v3438_v56 = vpop.f32.mrf.mxu0 }
 0x22e   : > { %v1120_v30 = vpop.f32.mrf.mxu0 }
 0x230   : > { %v3439_v3 = vpop.f32.mrf.mxu0 }
 0x232   : > { %v1123_v37 = vpop.f32.mrf.mxu0 }
 0x238   : > { %v3442_v27 = vpop.f32.mrf.mxu0 }
 0x239   : > { %v4565_v52 = vpop.f32.mrf.mxu1 }
 0x23a   : > { %v1136_v18 = vpop.f32.mrf.mxu0  ;;  %v1129_v48 = vadd.f32 %v3438_v56, %v4565_v52 }
 0x23b   : > { %v4567_v53 = vpop.f32.mrf.mxu1 }
 0x23c   : > { %v3443_v44 = vpop.f32.mrf.mxu0  ;;  %v1121_v43 = vadd.f32 %v1120_v30, %v4567_v53 }
 0x23d   : > { %v3415_v12 = vpop.f32.mrf.mxu1 }
 0x23e   : > { %v1139_v9 = vpop.f32.mrf.mxu0  ;;  %v1132_v50 = vadd.f32 %v3439_v3, %v3415_v12 }
 0x23f   : > { %v986_v28 = vpop.f32.mrf.mxu1 }
 0x240   : > { %v1124_v22 = vadd.f32 %v1123_v37, %v986_v28 }
 0x241   : > { %v4569_v59 = vpop.f32.mrf.mxu1 }
 0x242   : > { %v1145_v30 = vadd.f32 %v3442_v27, %v4569_v59 }
 0x243   : > { %v999_v63 = vpop.f32.mrf.mxu1 }
 0x245   : > { %v4571_v0 = vpop.f32.mrf.mxu1 }
 0x246   : > { %4688 = vst [vmem:[#allocation16_spill] sm:$0xff] %v4571_v0 }
 0x247   : > { %v4573_v2 = vpop.f32.mrf.mxu1 }
 0x248   : > { %4689 = vst [vmem:[#allocation17_spill] sm:$0xff] %v4573_v2  ;;  %v1137_v2 = vadd.f32 %v1136_v18, %v999_v63 }
 0x24d   : > { %v4693_v56 = vld [vmem:[#allocation16_spill] sm:$0xff] }
 0x24e   : > { %v3486_v14 = vpop.f32.mrf.mxu0  ;;  %v1148_v3 = vadd.f32 %v3443_v44, %v4693_v56 }
 0x250   : > { %v1495_v20 = vpop.f32.mrf.mxu0 }
 0x252   : > { %v3487_v46 = vpop.f32.mrf.mxu0 }
 0x254   : > { %v1498_v49 = vpop.f32.mrf.mxu0 }
 0x256   : > { %v3490_v38 = vpop.f32.mrf.mxu0 }
 0x258   : > { %v1511_v57 = vpop.f32.mrf.mxu0 }
 0x259   : > { %v3462_v17 = vpop.f32.mrf.mxu1 }
 0x25a   : > { %v3491_v10 = vpop.f32.mrf.mxu0  ;;  %v1358_v51 = vadd.f32 %v3462_v17, %v1129_v48 }
 0x25b   : > { %v1325_v6 = vpop.f32.mrf.mxu1 }
 0x25c   : > { %v1514_v1 = vpop.f32.mrf.mxu0  ;;  %v1356_v42 = vadd.f32 %v1325_v6, %v1121_v43  ;;  %v4694_v43 = vld [vmem:[#allocation17_spill] sm:$0xff] }
 0x25d   : > { %v3463_v4 = vpop.f32.mrf.mxu1  ;;  %v1140_v28 = vadd.f32 %v1139_v9, %v4694_v43 }
 0x25e   : > { %v1359_v61 = vadd.f32 %v3463_v4, %v1132_v50  ;;  %v1526_v55 = vadd.f32 %v1495_v20, %v1356_v42 }
 0x25f   : > { %v1328_v5 = vpop.f32.mrf.mxu1 }
 0x260   : > { %v1357_v54 = vadd.f32 %v1328_v5, %v1124_v22 }
 0x261   : > { %v3466_v15 = vpop.f32.mrf.mxu1 }
 0x262   : > { %v1527_v17 = vadd.f32 %v1498_v49, %v1357_v54  ;;  %v1362_v37 = vadd.f32 %v3466_v15, %v1145_v30 }
 0x263   : > { %v1341_v21 = vpop.f32.mrf.mxu1 }
 0x264   : > { %v1360_v12 = vadd.f32 %v1341_v21, %v1137_v2  ;;  %v1532_v27 = vadd.f32 %v3490_v38, %v1362_v37 }
 0x265   : > { %v3467_v16 = vpop.f32.mrf.mxu1 }
 0x266   : > { %v1363_v5 = vadd.f32 %v3467_v16, %v1148_v3 }
 0x267   : > { %v1344_v45 = vpop.f32.mrf.mxu1 }
 0x268   : > { %v1361_v48 = vadd.f32 %v1344_v45, %v1140_v28  ;;  %v1533_v2 = vadd.f32 %v3491_v10, %v1363_v5 }
 0x26a   : > { %v1531_v9 = vadd.f32 %v1514_v1, %v1361_v48  ;;  %v3192_v1 = vld [vmem:[%s4654_s4] ss:$0 sm:$0xff] }
 0x26f   : > { %v3534_v24 = vpop.f32.mrf.mxu0 }
 0x271   : > { %v1987_v11 = vpop.f32.mrf.mxu0 }
 0x273   : > { %v3535_v26 = vpop.f32.mrf.mxu0 }
 0x275   : > { %v1990_v34 = vpop.f32.mrf.mxu0 }
 0x277   : > { %v4575_v19 = vpop.f32.mrf.mxu0 }
 0x278   : > { %4690 = vst [vmem:[#allocation18_spill] sm:$0xff] %v4575_v19  ;;  %v1528_v19 = vadd.f32 %v3486_v14, %v1358_v51 }
 0x279   : > { %v3510_v60 = vpop.f32.mrf.mxu1  ;;  %v2003_v7 = vpop.f32.mrf.mxu0 }
 0x27a   : > { %v1810_v53 = vadd.f32 %v3510_v60, %v1528_v19 }
 0x27b   : > { %v1777_v33 = vpop.f32.mrf.mxu1  ;;  %v4577_v40 = vpop.f32.mrf.mxu0 }
 0x27c   : > { %4691 = vst [vmem:[#allocation19_spill] sm:$0xff] %v4577_v40  ;;  %v1808_v0 = vadd.f32 %v1777_v33, %v1526_v55  ;;  %v2020_v18 = vadd.f32 %v3534_v24, %v1810_v53 }
 0x27d   : > { %v3511_v62 = vpop.f32.mrf.mxu1  ;;  %v4579_v13 = vpop.f32.mrf.mxu0 }
 0x27e   : > { %4692 = vst [vmem:[#allocation20_spill] sm:$0xff] %v4579_v13  ;;  %v1529_v13 = vadd.f32 %v3487_v46, %v1359_v61  ;;  %v2018_v14 = vadd.f32 %v1987_v11, %v1808_v0  ;;  %v1530_v46 = vadd.f32 %v1511_v57, %v1360_v12 }
 0x27f   : > { %v1780_v23 = vpop.f32.mrf.mxu1 }
 0x280   : > { %v1811_v6 = vadd.f32 %v3511_v62, %v1529_v13  ;;  %v1809_v20 = vadd.f32 %v1780_v23, %v1527_v17 }
 0x281   : > { %v3514_v25 = vpop.f32.mrf.mxu1 }
 0x282   : > { %v2021_v59 = vadd.f32 %v3535_v26, %v1811_v6  ;;  %v2019_v49 = vadd.f32 %v1990_v34, %v1809_v20  ;;  %v1814_v62 = vadd.f32 %v3514_v25, %v1532_v27 }
 0x283   : > { %v1793_v31 = vpop.f32.mrf.mxu1  ;;  %v4696_v34 = vld [vmem:[#allocation19_spill] sm:$0xff] }
 0x284   : > { %v1812_v44 = vadd.f32 %v1793_v31, %v1530_v46 }
 0x285   : > { %v3515_v29 = vpop.f32.mrf.mxu1 }
 0x286   : > { %v1815_v16 = vadd.f32 %v3515_v29, %v1533_v2  ;;  %v2022_v57 = vadd.f32 %v2003_v7, %v1812_v44 }
 0x287   : > { %v1796_v35 = vpop.f32.mrf.mxu1 }
 0x288   : > { %v1813_v45 = vadd.f32 %v1796_v35, %v1531_v9  ;;  %v2025_v25 = vadd.f32 %v4696_v34, %v1815_v16  ;;  %v3193_v9 = vld [vmem:[%s4656_s6] ss:$0 sm:$0xff]  ;;  %v3842_v16 = vld [vmem:[%s4229_s12 + $0x8] sm:$0xff]  }
 0x28f   : > { %v3582_v47 = vpop.f32.mrf.mxu0 }
 0x291   : > { %v2440_v32 = vpop.f32.mrf.mxu0 }
 0x293   : > { %v3583_v52 = vpop.f32.mrf.mxu0 }
 0x295   : > { %v2443_v63 = vpop.f32.mrf.mxu0 }
 0x297   : > { %v3586_v15 = vpop.f32.mrf.mxu0 }
 0x299   : > { %v3558_v36 = vpop.f32.mrf.mxu1  ;;  %v2456_v38 = vpop.f32.mrf.mxu0 }
 0x29a   : > { %v2191_v60 = vadd.f32 %v3558_v36, %v2020_v18  ;;  %v4695_v36 = vld [vmem:[#allocation18_spill] sm:$0xff] }
 0x29b   : > { %v2158_v8 = vpop.f32.mrf.mxu1  ;;  %v2024_v50 = vadd.f32 %v4695_v36, %v1814_v62  ;;  %v3587_v54 = vpop.f32.mrf.mxu0 }
 0x29c   : > { %v2189_v33 = vadd.f32 %v2158_v8, %v2018_v14  ;;  %v2473_v11 = vadd.f32 %v3582_v47, %v2191_v60  ;;  %v4697_v47 = vld [vmem:[#allocation20_spill] sm:$0xff] }
 0x29d   : > { %v3559_v41 = vpop.f32.mrf.mxu1  ;;  %v2023_v42 = vadd.f32 %v4697_v47, %v1813_v45  ;;  %v2459_v28 = vpop.f32.mrf.mxu0  ;;  %v3843_v45 = vld [vmem:[%s4229_s12] sm:$0xff]  }
 0x29e   : > { %v2192_v21 = vadd.f32 %v3559_v41, %v2021_v59  ;;  %v2471_v0 = vadd.f32 %v2440_v32, %v2189_v33 }
 0x29f   : > { %v2161_v58 = vpop.f32.mrf.mxu1 }
 0x2a0   : > { %v2190_v23 = vadd.f32 %v2161_v58, %v2019_v49  ;;  %v2474_v26 = vadd.f32 %v3583_v52, %v2192_v21 }
 0x2a1   : > { %v3562_v39 = vpop.f32.mrf.mxu1 }
 0x2a2   : > { %v2472_v58 = vadd.f32 %v2443_v63, %v2190_v23  ;;  %v2195_v35 = vadd.f32 %v3562_v39, %v2024_v50  ;;  %v2854_v23 = vunpack.c.l.bf16 %v3842_v16 }
 0x2a3   : > { %v2174_v40 = vpop.f32.mrf.mxu1 }
 0x2a4   : > { %v2193_v41 = vadd.f32 %v2174_v40, %v2022_v57  ;;  %v2477_v3 = vadd.f32 %v3586_v15, %v2195_v35  ;;  %v2855_v57 = vunpack.c.h.bf16 %v3842_v16 }
 0x2a5   : > { %v3563_v4 = vpop.f32.mrf.mxu1 }
 0x2a6   : > { %v2196_v51 = vadd.f32 %v3563_v4, %v2025_v25  ;;  %v2475_v52 = vadd.f32 %v2456_v38, %v2193_v41  ;;  %v3844_v25 = vld [vmem:[%s4229_s12 + $0x18] sm:$0xff]  }
 0x2a7   : > { %v2177_v19 = vpop.f32.mrf.mxu1 }
 0x2a8   : > { %v2194_v40 = vadd.f32 %v2177_v19, %v2023_v42  ;;  %v2478_v39 = vadd.f32 %v3587_v54, %v2196_v51 }
 0x2aa   : > { %v2476_v14 = vadd.f32 %v2459_v28, %v2194_v40 }
 0x2b9   : > { %v3606_v13 = vpop.f32.mrf.mxu1 }
 0x2ba   : > { %v2683_v31 = vadd.f32 %v3606_v13, %v2473_v11  ;;  %v2852_v11 = vunpack.c.l.bf16 %v3843_v45 }
 0x2bb   : > { %v2650_v24 = vpop.f32.mrf.mxu1 }
 0x2bc   : > { %v2681_v8 = vadd.f32 %v2650_v24, %v2471_v0  ;;  %v2698_v55 = vadd.f32 %v3192_v1, %v2683_v31 }
 0x2bd   : > { %v3607_v10 = vpop.f32.mrf.mxu1 }
 0x2be   : > { %v2684_v29 = vadd.f32 %v3607_v10, %v2474_v26  ;;  %v2696_v22 = vadd.f32 %v3192_v1, %v2681_v8  ;;  %v2706_v37 = vmax.f32 %v2698_v55, 0.0  ;;  %v2853_v26 = vunpack.c.h.bf16 %v3843_v45 }
 0x2bf   : > { %v2653_v7 = vpop.f32.mrf.mxu1 }
 0x2c0   : > { %v2699_v61 = vadd.f32 %v3192_v1, %v2684_v29  ;;  %v2682_v32 = vadd.f32 %v2653_v7, %v2472_v58  ;;  %v2704_v6 = vmax.f32 %v2696_v22, 0.0  ;;  %v3845_v7 = vld [vmem:[%s4229_s12 + $0x10] sm:$0xff]   ;;  %v2859_v22 = vunpack.c.h.bf16 %v3844_v25  ;;  %s3952_s12 = scalar_lea.vmem %s4602_s21, 512 }
 0x2c1   : > { %v3610_v30 = vpop.f32.mrf.mxu1  ;;  %v2856_v51 = vunpack.c.l.bf16 %v3845_v7  ;;  %p3953_p7 = scmp.ne.s32.totalorder %s4602_s21, %s3952_s12  ;;  %p3960_p0 = scmp.lt.s32.totalorder %s3958_s9, %s3952_s12 }
 0x2c2   : > { %v2697_v53 = vadd.f32 %v3192_v1, %v2682_v32  ;;  %v2707_v56 = vmax.f32 %v2699_v61, 0.0  ;;  %v2687_v5 = vadd.f32 %v3610_v30, %v2477_v3 }
 0x2c3   : > { %v2666_v12 = vpop.f32.mrf.mxu1  ;;  %p3954_p12 = pnand %p3953_p7, %p4698_p1  ;;  %p3961_p2 = por %p3960_p0, %p3959_p13 }
 0x2c4   : > { %v2705_v17 = vmax.f32 %v2697_v53, 0.0  ;;  %v2685_v43 = vadd.f32 %v2666_v12, %v2475_v52  ;;  %v2713_v63 = vpack.c.bf16 %v2707_v56, %v2706_v37  ;;  %v2702_v27 = vadd.f32 %v3192_v1, %v2687_v5 }
 0x2c5   : > { %v3611_v4 = vpop.f32.mrf.mxu1  ;;  %v2857_v56 = vunpack.c.h.bf16 %v3845_v7  ;;  %p3955_p9 = pneg %p3954_p12 }
 0x2c6   : > { %v2688_v20 = vadd.f32 %v3611_v4, %v2478_v39  ;;  %v2712_v48 = vpack.c.bf16 %v2705_v17, %v2704_v6  ;;  %v2700_v46 = vadd.f32 %v3192_v1, %v2685_v43  ;;  %v2710_v21 = vmax.f32 %v2702_v27, 0.0 }
 0x2c7   : > { %v2669_v18 = vpop.f32.mrf.mxu1  ;;  %p3962_p10 = pnand %p3961_p2, %p3955_p9 }
 0x2c8   : > { %v2703_v33 = vadd.f32 %v3192_v1, %v2688_v20  ;;  %v2686_v59 = vadd.f32 %v2669_v18, %v2476_v14  ;;  %3628 = vmatprep.mubr.bf16.mxu0 %v2712_v48  ;;  %v2708_v44 = vmax.f32 %v2700_v46, 0.0 }
 0x2c9   : > { %3629 = vmatmul.mubr.bf16.vlgmr.msra.gmra.mxu0 %v2713_v63 }
 0x2ca   : > { %v2701_v60 = vadd.f32 %v3192_v1, %v2686_v59  ;;  %v2711_v19 = vmax.f32 %v2703_v33, 0.0  ;;  %v2858_v1 = vunpack.c.l.bf16 %v3844_v25 }
 0x2cc   : > { %v2709_v2 = vmax.f32 %v2701_v60, 0.0  ;;  %v2715_v62 = vpack.c.bf16 %v2711_v19, %v2710_v21 }
 0x2ce   : > { %v2714_v49 = vpack.c.bf16 %v2709_v2, %v2708_v44 }
 0x2d0   : > { %3632 = vmatprep.mubr.bf16.mxu1 %v2714_v49 }
 0x2d1   : > { %3633 = vmatmul.mubr.bf16.vlgmr.msra.gmra.mxu1 %v2715_v62 }
 0x389   : > { %v3630_v15 = vpop.f32.mrf.mxu0 }
 0x38a   : > { %v2830_v13 = vadd.f32 %v3630_v15, %v3193_v9 }
 0x38b   : > { %v2821_v0 = vpop.f32.mrf.mxu0 }
 0x38c   : > { %v2822_v24 = vadd.f32 %v3193_v9, %v2821_v0  ;;  %v2862_v38 = vadd.f32 %v2854_v23, %v2830_v13 }
 0x38d   : > { %v3631_v8 = vpop.f32.mrf.mxu0 }
 0x38e   : > { %v2833_v36 = vadd.f32 %v3631_v8, %v3193_v9  ;;  %v2860_v31 = vadd.f32 %v2852_v11, %v2822_v24  ;;  %v2870_v29 = vmax.f32 %v2862_v38, 0.0 }
 0x38f   : > { %v2824_v50 = vpop.f32.mrf.mxu0 }
 0x390   : > { %v2863_v10 = vadd.f32 %v2855_v57, %v2833_v36  ;;  %v2825_v41 = vadd.f32 %v3193_v9, %v2824_v50  ;;  %v2868_v61 = vmax.f32 %v2860_v31, 0.0 }
 0x391   : > { %v3634_v34 = vpop.f32.mrf.mxu1 }
 0x392   : > { %v2871_v58 = vmax.f32 %v2863_v10, 0.0  ;;  %v2861_v35 = vadd.f32 %v2853_v26, %v2825_v41  ;;  %v2846_v47 = vadd.f32 %v3634_v34, %v3193_v9 }
 0x393   : > { %v2837_v42 = vpop.f32.mrf.mxu1 }
 0x394   : > { %v3225_v32 = vpack.c.bf16 %v2871_v58, %v2870_v29  ;;  %v2869_v54 = vmax.f32 %v2861_v35, 0.0  ;;  %v2838_v55 = vadd.f32 %v3193_v9, %v2837_v42  ;;  %v2866_v53 = vadd.f32 %v2858_v1, %v2846_v47 }
 0x395   : > { %v3635_v30 = vpop.f32.mrf.mxu1 }
 0x396   : > { %3237 = vst [vmem:[%s340_s11 + $0x8] sm:$0xff] %v3225_v32   ;;  %v3220_v40 = vpack.c.bf16 %v2869_v54, %v2868_v61  ;;  %v2849_v52 = vadd.f32 %v3635_v30, %v3193_v9  ;;  %v2864_v12 = vadd.f32 %v2856_v51, %v2838_v55  ;;  %v2874_v43 = vmax.f32 %v2866_v53, 0.0 }
 0x397   : > { %v2840_v3 = vpop.f32.mrf.mxu1 }
 0x398   : > { %3221 = vst [vmem:[%s340_s11] sm:$0xff] %v3220_v40   ;;  %v2867_v6 = vadd.f32 %v2859_v22, %v2849_v52  ;;  %v2841_v17 = vadd.f32 %v3193_v9, %v2840_v3  ;;  %v2872_v37 = vmax.f32 %v2864_v12, 0.0 }
 0x39a   : > { %v2875_v39 = vmax.f32 %v2867_v6, 0.0  ;;  %v2865_v28 = vadd.f32 %v2857_v56, %v2841_v17 }
 0x39c   : > { %v3235_v5 = vpack.c.bf16 %v2875_v39, %v2874_v43  ;;  %v2873_v4 = vmax.f32 %v2865_v28, 0.0 }
 0x39e   : > { %3239 = vst [vmem:[%s340_s11 + $0x18] sm:$0xff] %v3235_v5   ;;  %v3230_v20 = vpack.c.bf16 %v2873_v4, %v2872_v37 }
 0x3a0   : > { %3238 = vst [vmem:[%s340_s11 + $0x10] sm:$0xff] %v3230_v20  }
 0x3a1   : > { %3965 = shalt.err (!%p3962_p10)
}
 0x3a2   : > { %s3966_s10 = scalar_lea.hbm %s4607_s1, 512  ;;  %s3970_s29 = scalar_lea.hbm %s4657_s7, 1024 }
 0x3a3   : > { %p3967_p6 = scmp.ne.s32.totalorder %s4607_s1, %s3966_s10  ;;  %p3971_p3 = scmp.lt.s32.totalorder %s4607_s1, %s4657_s7 }
 0x3a4   : > { %p3972_p11 = scmp.lt.s32.totalorder %s3970_s29, %s3966_s10 }
 0x3a5   : > { %p3968_p4 = pnand %p3967_p6, %p4698_p1 }
 0x3a6   : > { %p3973_p5 = por %p3972_p11, %p3971_p3 }
 0x3a7   : > { %p3969_p8 = pneg %p3968_p4 }
 0x3a9   : > { %p3974_p7 = pnand %p3973_p5, %p3969_p8 }
 0x3ab   : > { %3977 = shalt.err (!%p3974_p7)
}
 0x3ac   : > { %s4034_s18 = smov 64   ;;  %s4035_s23 = smov 4  }
 0x3ad   : > { %3666 = dma.vmem_to_hbm [thread:$0]  (%p4698_p1), %s4602_s21, 512, %s4607_s1, %s2893_s16, %s4034_s18, %s4034_s18, %s4035_s23  }
 0x3ae PF: > { %s2921_s12 = sand.u32 1, %s4012_s24   ;;  %p4699_p12 = scmp.ne.s32.totalorder %s4666_s8, 0 }
 0x3af   : > { %p4700_p9 = scmp.ge.s32.totalorder %s4024_s27, 2  ;;  %s2922_s28 = scalar_lea.sflag [#allocation5], %s2921_s12 }
 0x3b1   : > { %p3683_p13 = pnand %p4700_p9, %p4699_p12 }
 0x3b3   : > { %p3684_p0 = pneg %p3683_p13 }
 0x3b5   : > { %4007 = dma.done.wait (%p3684_p0), %s2922_s28, 512  }
 0x3b6   : > { %4009 = vsyncadd (%p3684_p0), %s2922_s28, 4294966784  ;;  %p22_p2 = scmp.ge.s32.totalorder %s4165_s14, 4   ;;  %s4701_s24 = smov %s4016_s25 }
 0x3b7   : > { %s4702_s25 = smov %s4020_s26  ;;  %s4703_s26 = smov %s4175_s17 }
 0x3b8   : > { %s4704_s27 = smov %s4165_s14  ;;  %24 = sbr.rel (!%p22_p2) target bundleno = 9 (0x9), region = 115 }
 0x3bd   :  { %2927 = vsyncpa [#allocation4], 1 }
 0x3be   :  { %2929 = vsyncpa [#allocation4 + $0x1], 1 }
 0x3bf   :  { %2930 = vsyncpa [#allocation7], 1 }
 0x3c0   :  { %2931 = vsyncpa [#allocation10], 1 }
 0x3c1   :  { %2932 = vsyncpa [#allocation5], 1 }
 0x3c2   :  { %2934 = vsyncpa [#allocation5 + $0x1], 1 }

</bundles_post_ra>
